<compile_context>
chip_gen: v6e
topology: v6e:2x2x1
jax: 0.10.0
libtpu: 0.0.40
codegen_flags: <defaults>
</compile_context>

<pallas_src>
import functools
import math

import jax
import jax.numpy as jnp
from jax.experimental import pallas as pl
from jax.experimental.pallas import tpu as pltpu

# ----------------------------- model config ---------------------------------
B = 2              # batch
L = 16             # signal length (so gamma4 flattens to CL[3]*16)
IC0 = 4            # opt.IC[0]  input channels
CL = [8, 8, 8, 8]  # opt.CL
KL = [3, 3, 3, 3]  # opt.KL
SL = [1, 1, 1, 1]  # opt.SL (this kernel implements stride=1)
PL = [1, 1, 1, 1]  # opt.PL
LATENT = 8         # opt.latent_dim
T_UNFOLD = 2       # opt.unfoldings
ACTIVE_TYPE = "Soft"   # 'Soft' | 'Hard' | 'ReLU'

C = 8              # uniform (padded) channel count inside the kernel
K = 3              # kernel taps
FLAT = C * L       # 128  flattened (channel, length) feature axis
FEAT = CL[3] * L   # 128
ML = 2 * LATENT    # mu & logvar concatenated

# ------------------------- packed parameter-slab layout ----------------------
ROWS_WK = 2 * FLAT                 # 256 rows per layer: [I - At@Ac ; Ac]
OFF_WK = 0                         # 4 * 256 rows of fused ISTA/encoder weights
OFF_WML = 4 * ROWS_WK              # 1024: mu|logvar weight (lanes 0:ML)
OFF_WDEC = OFF_WML + FLAT          # 1152: decode-linear @ composed decoder
OFF_LAM = OFF_WDEC + LATENT        # 1160: 4 rows of per-channel lambdas
OFF_DECB = OFF_LAM + 4             # 1164: composed decoder bias row
OFF_MLB = OFF_DECB + 1             # 1165: [mu_b | logvar_b] (lanes 0:ML)
P_ROWS = 1168                      # padded to a multiple of 8


# ------------------------------ Pallas kernel --------------------------------
def _threshold(t, lam, active_type):
    if active_type == "Soft":
        return (jnp.where(t > lam, t - lam, 0.0)
                + jnp.where(t < -lam, t + lam, 0.0))
    if active_type == "Hard":
        return jnp.where(t > lam, t, 0.0) + jnp.where(t < -lam, t, 0.0)
    # 'ReLU' variant in AAU_Net is relu(x + lambdas).
    return jnp.maximum(t + lam, 0.0)


def aau_kernel(active_type, test, x_ref, eps_ref, p_ref, xhat_ref, z_ref):
    f32 = jnp.float32
    x = x_ref[...]                                              # (B, FLAT)
    lam = [p_ref[OFF_LAM + i:OFF_LAM + i + 1, :] for i in range(4)]  # (1, FLAT)

    # ---------------- encoder: gamma_i = thrd(c_i * conv(prev, W_i)) ---------
    g = []
    prev = x
    for i in range(4):
        a3c = p_ref[OFF_WK + i * ROWS_WK + FLAT:OFF_WK + (i + 1) * ROWS_WK, :]
        prev = _threshold(jnp.dot(prev, a3c, preferred_element_type=f32),
                          lam[i], active_type)
        g.append(prev)

    # ---------------- T unrolled ISTA steps: one fused matmul per layer ------
    for _ in range(T_UNFOLD):
        prev = x
        for i in range(4):
            wk = p_ref[OFF_WK + i * ROWS_WK:OFF_WK + (i + 1) * ROWS_WK, :]
            u = jnp.concatenate([g[i], prev], axis=1)           # (B, 2*FLAT)
            g[i] = _threshold(jnp.dot(u, wk, preferred_element_type=f32),
                              lam[i], active_type)
            prev = g[i]

    # ---------------- latent head: mu / logvar / reparameterize --------------
    wml = p_ref[OFF_WML:OFF_WML + FLAT, 0:ML]                   # (FLAT, ML)
    mlb = p_ref[OFF_MLB:OFF_MLB + 1, 0:ML]                      # (1, ML)
    ml = jnp.dot(g[3], wml, preferred_element_type=f32) + mlb   # (B, ML)
    mu = ml[:, 0:LATENT]
    logvar = ml[:, LATENT:ML]
    z = eps_ref[...] * jnp.exp(logvar * 0.5) + mu               # (B, LATENT)
    zdec = mu if test else z
    z_ref[...] = zdec

    # ------ decode linear + precomposed 4-layer conv_transpose decoder -------
    wdec = p_ref[OFF_WDEC:OFF_WDEC + LATENT, :]                 # (LATENT, FLAT)
    decb = p_ref[OFF_DECB:OFF_DECB + 1, :]                      # (1, FLAT)
    xhat_ref[...] = jnp.dot(zdec, wdec, preferred_element_type=f32) + decb


# ------------------------- trace-time weight packing --------------------------
def _pad_w(W):
    co, ci, k = W.shape
    return jnp.pad(W, ((0, C - co), (0, C - ci), (0, 0)))


def _conv_matrix(Wp):
    """(C,C,K) conv1d weight (stride 1, pad 1) -> (FLAT, FLAT) matrix A so that
    y_flat = x_flat @ A, with flat index = channel*L + position."""
    s = jnp.arange(L)[:, None]
    t = jnp.arange(L)[None, :]
    k = s - t + 1
    valid = ((k >= 0) & (k < K)).astype(jnp.float32)            # (L, L)
    kc = jnp.clip(k, 0, K - 1)
    tap = Wp[:, :, kc] * valid[None, None]                      # (o, i, s, t)
    return jnp.transpose(tap, (1, 2, 0, 3)).reshape(FLAT, FLAT)


def _convT_matrix(W):
    """conv_transpose1d(x, W, stride=1, pad=1) == conv1d(x, We, pad=1) with
    We[o, i, k] = W[i, o, K-1-k]."""
    We = jnp.flip(jnp.transpose(W, (1, 0, 2)), axis=2)
    return _conv_matrix(_pad_w(We))


# ------------------------------ forward (jitted) ------------------------------
@functools.partial(jax.jit, static_argnames=("test",))
def forward(p, x, eps, test=False):
    hi = jax.lax.Precision.HIGHEST
    Ws = [p["W1"], p["W2"], p["W3"], p["W4"]]
    cs = [p["c1"], p["c2"], p["c3"], p["c4"]]

    a3c = [cs[i] * _conv_matrix(_pad_w(Ws[i])) for i in range(4)]   # c folded
    at = [_convT_matrix(Ws[i]) for i in range(4)]
    eye = jnp.eye(FLAT, dtype=jnp.float32)

    blocks = []
    for i in range(4):
        blocks.append(eye - jnp.dot(at[i], a3c[i], precision=hi))  # top half
        blocks.append(a3c[i])                                      # bottom half

    # whole decoder (4 x conv_transpose, no nonlinearity) precomposed with the
    # decode linear:  x_hat_flat = zdec @ (lin_W @ D) + lin_b @ D
    dec = at[3]
    for i in (2, 1, 0):
        dec = jnp.dot(dec, at[i], precision=hi)
    wdec = jnp.dot(p["lin_W"], dec, precision=hi)                   # (LATENT, FLAT)
    decb = jnp.dot(p["lin_b"][None, :], dec, precision=hi)          # (1, FLAT)

    wml = jnp.concatenate([p["mu_W"], p["lv_W"]], axis=1)           # (FLAT, ML)
    wml_pad = jnp.pad(wml, ((0, 0), (0, FLAT - ML)))
    lam_rows = jnp.stack([jnp.repeat(p[f"lam{i+1}"].reshape(CL[i]), L)
                          for i in range(4)])                       # (4, FLAT)
    mlb_row = jnp.pad(jnp.concatenate([p["mu_b"], p["lv_b"]])[None, :],
                      ((0, 0), (0, FLAT - ML)))                     # (1, FLAT)

    slab = jnp.concatenate(blocks + [wml_pad, wdec, lam_rows, decb, mlb_row],
                           axis=0)                                  # (1166, FLAT)
    slab = jnp.pad(slab, ((0, P_ROWS - slab.shape[0]), (0, 0)))     # (1168, FLAT)

    x_flat = jnp.pad(x, ((0, 0), (0, C - IC0), (0, 0))).reshape(B, FLAT)

    kern = functools.partial(aau_kernel, ACTIVE_TYPE, test)
    xhat_flat, z = pl.pallas_call(
        kern,
        grid=(1,),
        out_shape=(jax.ShapeDtypeStruct((B, FLAT), jnp.float32),
                   jax.ShapeDtypeStruct((B, LATENT), jnp.float32)),
        in_specs=[
            pl.BlockSpec((B, FLAT), lambda i: (0, 0)),              # x_flat
            pl.BlockSpec((B, LATENT), lambda i: (0, 0)),            # eps
            pl.BlockSpec((P_ROWS, FLAT), lambda i: (0, 0)),         # param slab
        ],
        out_specs=(pl.BlockSpec((B, FLAT), lambda i: (0, 0)),
                   pl.BlockSpec((B, LATENT), lambda i: (0, 0))),
        compiler_params=pltpu.CompilerParams(
            dimension_semantics=("arbitrary",)),
        cost_estimate=pl.CostEstimate(flops=1_600_000, transcendentals=48,
                                      bytes_accessed=620_000),
    )(x_flat, eps, slab)

    return xhat_flat.reshape(B, C, L)[:, :IC0, :], z


# ------------------------------ parameters -----------------------------------
def init_params(key):
    ks = jax.random.split(key, 9)
    p = {}
    p["W1"] = jax.random.normal(ks[0], (CL[0], IC0, KL[0]), jnp.float32) \
        * (0.1 / math.sqrt(IC0 * KL[0]))
    p["W2"] = jax.random.normal(ks[1], (CL[1], CL[0], KL[1]), jnp.float32) \
        * (0.1 / math.sqrt(CL[0] * KL[1]))
    p["W3"] = jax.random.normal(ks[2], (CL[2], CL[1], KL[2]), jnp.float32) \
        * (0.1 / math.sqrt(CL[1] * KL[2]))
    p["W4"] = jax.random.normal(ks[3], (CL[3], CL[2], KL[3]), jnp.float32) \
        * (0.1 / math.sqrt(CL[2] * KL[3]))
    for i in range(4):
        p[f"c{i+1}"] = jnp.ones((), jnp.float32)
        p[f"lam{i+1}"] = 0.001 * jnp.ones((1, CL[i], 1), jnp.float32)
    p["mu_W"] = jax.random.normal(ks[4], (FEAT, LATENT), jnp.float32) / math.sqrt(FEAT)
    p["mu_b"] = jnp.zeros((LATENT,), jnp.float32)
    p["lv_W"] = jax.random.normal(ks[5], (FEAT, LATENT), jnp.float32) / math.sqrt(FEAT)
    p["lv_b"] = jnp.zeros((LATENT,), jnp.float32)
    p["lin_W"] = jax.random.normal(ks[6], (LATENT, FEAT), jnp.float32) / math.sqrt(LATENT)
    p["lin_b"] = jnp.zeros((FEAT,), jnp.float32)
    return p


# --------------------- pure jax/lax reference (for checking) ------------------
def reference_forward(p, x, eps, test=False):
    hi = jax.lax.Precision.HIGHEST
    Ws = [p["W1"], p["W2"], p["W3"], p["W4"]]
    cs = [p["c1"], p["c2"], p["c3"], p["c4"]]
    lams = [p["lam1"], p["lam2"], p["lam3"], p["lam4"]]

    def conv(v, W, pad):
        return jax.lax.conv_general_dilated(
            v, W, (1,), [(pad, pad)],
            dimension_numbers=("NCH", "OIH", "NCH"), precision=hi)

    def convT(v, W, pad):
        We = jnp.flip(jnp.transpose(W, (1, 0, 2)), axis=2)
        return conv(v, We, W.shape[2] - 1 - pad)

    def thr(t, lam):
        if ACTIVE_TYPE == "Soft":
            m1 = (t > lam).astype(jnp.float32)
            m2 = (t < -lam).astype(jnp.float32)
            return m1 * (t - lam) + m2 * (t + lam)
        if ACTIVE_TYPE == "Hard":
            m1 = (t > lam).astype(jnp.float32)
            m2 = (t < -lam).astype(jnp.float32)
            return (m1 + m2) * t
        return jax.nn.relu(t + lam)

    g = []
    prev = x
    for i in range(4):
        prev = thr(cs[i] * conv(prev, Ws[i], PL[i]), lams[i])
        g.append(prev)
    for _ in range(T_UNFOLD):
        prev = x
        for i in range(4):
            resid = convT(g[i], Ws[i], PL[i]) - prev
            g[i] = thr(g[i] - cs[i] * conv(resid, Ws[i], PL[i]), lams[i])
            prev = g[i]
    flat = g[3].reshape(B, -1)
    mu = jnp.dot(flat, p["mu_W"], precision=hi) + p["mu_b"]
    logvar = jnp.dot(flat, p["lv_W"], precision=hi) + p["lv_b"]
    z = eps * jnp.exp(logvar * 0.5) + mu
    if test:
        z = mu
        g4h = (jnp.dot(mu, p["lin_W"], precision=hi) + p["lin_b"]).reshape(g[3].shape)
    else:
        g4h = (jnp.dot(z, p["lin_W"], precision=hi) + p["lin_b"]).reshape(g[3].shape)
    h = g4h
    for i in (3, 2, 1, 0):
        h = convT(h, Ws[i], PL[i])
    return h, z


# ------------------------------ main ------------------------------------------
if __name__ == "__main__":
    key = jax.random.PRNGKey(0)
    k_param, k_x, k_eps = jax.random.split(key, 3)

    params = init_params(k_param)
    x = jax.random.normal(k_x, (B, IC0, L), jnp.float32)
    # TODO(synk): PyTorch draws eps with np.random.normal inside the model;
    # here the N(0,1) sample is generated deterministically with jax.random and
    # combined with mu/std inside the fused Pallas kernel.
    eps = jax.random.normal(k_eps, (B, LATENT), jnp.float32)

    x_hat, z = forward(params, x, eps, test=False)
    x_hat = jax.block_until_ready(x_hat)
    z = jax.block_until_ready(z)

    assert x_hat.shape == (B, IC0, L), x_hat.shape
    assert z.shape == (B, LATENT), z.shape
    assert bool(jnp.all(jnp.isfinite(x_hat))) and bool(jnp.all(jnp.isfinite(z)))

    # numerics check against the pure jax/lax reference of the PyTorch forward
    x_hat_ref, z_ref_val = reference_forward(params, x, eps, test=False)
    assert jnp.allclose(x_hat, x_hat_ref, atol=2e-3, rtol=2e-2), \
        float(jnp.max(jnp.abs(x_hat - x_hat_ref)))
    assert jnp.allclose(z, z_ref_val, atol=2e-3, rtol=2e-2), \
        float(jnp.max(jnp.abs(z - z_ref_val)))

    print("KERNEL_OK")
</pallas_src>

<mosaic_0001>
module attributes {stable_mosaic.version = 11 : i64} {
  func.func @aau_kernel(%arg0: i32, %arg1: memref<2x128xf32, #tpu.memory_space<vmem>>, %arg2: memref<2x8xf32, #tpu.memory_space<vmem>>, %arg3: memref<1168x128xf32, #tpu.memory_space<vmem>>, %arg4: memref<2x128xf32, #tpu.memory_space<vmem>>, %arg5: memref<2x8xf32, #tpu.memory_space<vmem>>) attributes {dimension_semantics = [#tpu.dimension_semantics<arbitrary>], iteration_bounds = array<i64: 1>, scalar_prefetch = 0 : i64, scratch_operands = 0 : i64, tpu.core_type = #tpu.core_type<tc>, window_params = [{pipeline_mode = #tpu.pipeline_mode<synchronous>, transform_indices = @transform_0, window_bounds = array<i64: 2, 128>}, {pipeline_mode = #tpu.pipeline_mode<synchronous>, transform_indices = @transform_1, window_bounds = array<i64: 2, 8>}, {pipeline_mode = #tpu.pipeline_mode<synchronous>, transform_indices = @transform_2, window_bounds = array<i64: 1168, 128>}, {pipeline_mode = #tpu.pipeline_mode<synchronous>, transform_indices = @transform_3, window_bounds = array<i64: 2, 128>}, {pipeline_mode = #tpu.pipeline_mode<synchronous>, transform_indices = @transform_4, window_bounds = array<i64: 2, 8>}]} {
    %c0 = arith.constant 0 : index
    %c0_0 = arith.constant 0 : index
    %0 = vector.load %arg1[%c0, %c0_0] : memref<2x128xf32, #tpu.memory_space<vmem>>, vector<2x128xf32>
    %c1160 = arith.constant 1160 : index
    %c0_1 = arith.constant 0 : index
    %1 = vector.load %arg3[%c1160, %c0_1] : memref<1168x128xf32, #tpu.memory_space<vmem>>, vector<1x128xf32>
    %c1161 = arith.constant 1161 : index
    %c0_2 = arith.constant 0 : index
    %2 = vector.load %arg3[%c1161, %c0_2] : memref<1168x128xf32, #tpu.memory_space<vmem>>, vector<1x128xf32>
    %c1162 = arith.constant 1162 : index
    %c0_3 = arith.constant 0 : index
    %3 = vector.load %arg3[%c1162, %c0_3] : memref<1168x128xf32, #tpu.memory_space<vmem>>, vector<1x128xf32>
    %c1163 = arith.constant 1163 : index
    %c0_4 = arith.constant 0 : index
    %4 = vector.load %arg3[%c1163, %c0_4] : memref<1168x128xf32, #tpu.memory_space<vmem>>, vector<1x128xf32>
    %c128 = arith.constant 128 : index
    %c0_5 = arith.constant 0 : index
    %5 = vector.load %arg3[%c128, %c0_5] : memref<1168x128xf32, #tpu.memory_space<vmem>>, vector<128x128xf32>
    %cst = arith.constant dense<0.000000e+00> : vector<2x128xf32>
    %6 = tpu.matmul %0, %5, %cst {dimension_numbers = #tpu.dot_dimension_numbers<[1], [0], [0], [1], [0, 0, 1, 1], [], []>} : vector<2x128xf32>, vector<128x128xf32>, vector<2x128xf32> -> vector<2x128xf32>
    %7 = vector.broadcast %1 : vector<1x128xf32> to vector<2x128xf32>
    %8 = arith.cmpf ogt, %6, %7 : vector<2x128xf32>
    %9 = vector.broadcast %1 : vector<1x128xf32> to vector<2x128xf32>
    %10 = arith.subf %6, %9 : vector<2x128xf32>
    %cst_6 = arith.constant 0.000000e+00 : f32
    %11 = vector.broadcast %cst_6 : f32 to vector<2x128xf32>
    %12 = arith.select %8, %10, %11 : vector<2x128xi1>, vector<2x128xf32>
    %cst_7 = arith.constant 0.000000e+00 : f32
    %13 = vector.broadcast %cst_7 : f32 to vector<1x128xf32>
    %14 = arith.subf %13, %1 : vector<1x128xf32>
    %15 = vector.broadcast %14 : vector<1x128xf32> to vector<2x128xf32>
    %16 = arith.cmpf olt, %6, %15 : vector<2x128xf32>
    %17 = vector.broadcast %1 : vector<1x128xf32> to vector<2x128xf32>
    %18 = arith.addf %6, %17 : vector<2x128xf32>
    %cst_8 = arith.constant 0.000000e+00 : f32
    %19 = vector.broadcast %cst_8 : f32 to vector<2x128xf32>
    %20 = arith.select %16, %18, %19 : vector<2x128xi1>, vector<2x128xf32>
    %21 = arith.addf %12, %20 : vector<2x128xf32>
    %c384 = arith.constant 384 : index
    %c0_9 = arith.constant 0 : index
    %22 = vector.load %arg3[%c384, %c0_9] : memref<1168x128xf32, #tpu.memory_space<vmem>>, vector<128x128xf32>
    %cst_10 = arith.constant dense<0.000000e+00> : vector<2x128xf32>
    %23 = tpu.matmul %21, %22, %cst_10 {dimension_numbers = #tpu.dot_dimension_numbers<[1], [0], [0], [1], [0, 0, 1, 1], [], []>} : vector<2x128xf32>, vector<128x128xf32>, vector<2x128xf32> -> vector<2x128xf32>
    %24 = vector.broadcast %2 : vector<1x128xf32> to vector<2x128xf32>
    %25 = arith.cmpf ogt, %23, %24 : vector<2x128xf32>
    %26 = vector.broadcast %2 : vector<1x128xf32> to vector<2x128xf32>
    %27 = arith.subf %23, %26 : vector<2x128xf32>
    %cst_11 = arith.constant 0.000000e+00 : f32
    %28 = vector.broadcast %cst_11 : f32 to vector<2x128xf32>
    %29 = arith.select %25, %27, %28 : vector<2x128xi1>, vector<2x128xf32>
    %cst_12 = arith.constant 0.000000e+00 : f32
    %30 = vector.broadcast %cst_12 : f32 to vector<1x128xf32>
    %31 = arith.subf %30, %2 : vector<1x128xf32>
    %32 = vector.broadcast %31 : vector<1x128xf32> to vector<2x128xf32>
    %33 = arith.cmpf olt, %23, %32 : vector<2x128xf32>
    %34 = vector.broadcast %2 : vector<1x128xf32> to vector<2x128xf32>
    %35 = arith.addf %23, %34 : vector<2x128xf32>
    %cst_13 = arith.constant 0.000000e+00 : f32
    %36 = vector.broadcast %cst_13 : f32 to vector<2x128xf32>
    %37 = arith.select %33, %35, %36 : vector<2x128xi1>, vector<2x128xf32>
    %38 = arith.addf %29, %37 : vector<2x128xf32>
    %c640 = arith.constant 640 : index
    %c0_14 = arith.constant 0 : index
    %39 = vector.load %arg3[%c640, %c0_14] : memref<1168x128xf32, #tpu.memory_space<vmem>>, vector<128x128xf32>
    %cst_15 = arith.constant dense<0.000000e+00> : vector<2x128xf32>
    %40 = tpu.matmul %38, %39, %cst_15 {dimension_numbers = #tpu.dot_dimension_numbers<[1], [0], [0], [1], [0, 0, 1, 1], [], []>} : vector<2x128xf32>, vector<128x128xf32>, vector<2x128xf32> -> vector<2x128xf32>
    %41 = vector.broadcast %3 : vector<1x128xf32> to vector<2x128xf32>
    %42 = arith.cmpf ogt, %40, %41 : vector<2x128xf32>
    %43 = vector.broadcast %3 : vector<1x128xf32> to vector<2x128xf32>
    %44 = arith.subf %40, %43 : vector<2x128xf32>
    %cst_16 = arith.constant 0.000000e+00 : f32
    %45 = vector.broadcast %cst_16 : f32 to vector<2x128xf32>
    %46 = arith.select %42, %44, %45 : vector<2x128xi1>, vector<2x128xf32>
    %cst_17 = arith.constant 0.000000e+00 : f32
    %47 = vector.broadcast %cst_17 : f32 to vector<1x128xf32>
    %48 = arith.subf %47, %3 : vector<1x128xf32>
    %49 = vector.broadcast %48 : vector<1x128xf32> to vector<2x128xf32>
    %50 = arith.cmpf olt, %40, %49 : vector<2x128xf32>
    %51 = vector.broadcast %3 : vector<1x128xf32> to vector<2x128xf32>
    %52 = arith.addf %40, %51 : vector<2x128xf32>
    %cst_18 = arith.constant 0.000000e+00 : f32
    %53 = vector.broadcast %cst_18 : f32 to vector<2x128xf32>
    %54 = arith.select %50, %52, %53 : vector<2x128xi1>, vector<2x128xf32>
    %55 = arith.addf %46, %54 : vector<2x128xf32>
    %c896 = arith.constant 896 : index
    %c0_19 = arith.constant 0 : index
    %56 = vector.load %arg3[%c896, %c0_19] : memref<1168x128xf32, #tpu.memory_space<vmem>>, vector<128x128xf32>
    %cst_20 = arith.constant dense<0.000000e+00> : vector<2x128xf32>
    %57 = tpu.matmul %55, %56, %cst_20 {dimension_numbers = #tpu.dot_dimension_numbers<[1], [0], [0], [1], [0, 0, 1, 1], [], []>} : vector<2x128xf32>, vector<128x128xf32>, vector<2x128xf32> -> vector<2x128xf32>
    %58 = vector.broadcast %4 : vector<1x128xf32> to vector<2x128xf32>
    %59 = arith.cmpf ogt, %57, %58 : vector<2x128xf32>
    %60 = vector.broadcast %4 : vector<1x128xf32> to vector<2x128xf32>
    %61 = arith.subf %57, %60 : vector<2x128xf32>
    %cst_21 = arith.constant 0.000000e+00 : f32
    %62 = vector.broadcast %cst_21 : f32 to vector<2x128xf32>
    %63 = arith.select %59, %61, %62 : vector<2x128xi1>, vector<2x128xf32>
    %cst_22 = arith.constant 0.000000e+00 : f32
    %64 = vector.broadcast %cst_22 : f32 to vector<1x128xf32>
    %65 = arith.subf %64, %4 : vector<1x128xf32>
    %66 = vector.broadcast %65 : vector<1x128xf32> to vector<2x128xf32>
    %67 = arith.cmpf olt, %57, %66 : vector<2x128xf32>
    %68 = vector.broadcast %4 : vector<1x128xf32> to vector<2x128xf32>
    %69 = arith.addf %57, %68 : vector<2x128xf32>
    %cst_23 = arith.constant 0.000000e+00 : f32
    %70 = vector.broadcast %cst_23 : f32 to vector<2x128xf32>
    %71 = arith.select %67, %69, %70 : vector<2x128xi1>, vector<2x128xf32>
    %72 = arith.addf %63, %71 : vector<2x128xf32>
    %c0_24 = arith.constant 0 : index
    %c0_25 = arith.constant 0 : index
    %73 = vector.load %arg3[%c0_24, %c0_25] : memref<1168x128xf32, #tpu.memory_space<vmem>>, vector<256x128xf32>
    %74 = tpu.concatenate %21, %0 in 1 : vector<2x128xf32>, vector<2x128xf32> -> vector<2x256xf32>
    %cst_26 = arith.constant dense<0.000000e+00> : vector<2x128xf32>
    %75 = tpu.matmul %74, %73, %cst_26 {dimension_numbers = #tpu.dot_dimension_numbers<[1], [0], [0], [1], [0, 0, 1, 1], [], []>} : vector<2x256xf32>, vector<256x128xf32>, vector<2x128xf32> -> vector<2x128xf32>
    %76 = vector.broadcast %1 : vector<1x128xf32> to vector<2x128xf32>
    %77 = arith.cmpf ogt, %75, %76 : vector<2x128xf32>
    %78 = vector.broadcast %1 : vector<1x128xf32> to vector<2x128xf32>
    %79 = arith.subf %75, %78 : vector<2x128xf32>
    %cst_27 = arith.constant 0.000000e+00 : f32
    %80 = vector.broadcast %cst_27 : f32 to vector<2x128xf32>
    %81 = arith.select %77, %79, %80 : vector<2x128xi1>, vector<2x128xf32>
    %cst_28 = arith.constant 0.000000e+00 : f32
    %82 = vector.broadcast %cst_28 : f32 to vector<1x128xf32>
    %83 = arith.subf %82, %1 : vector<1x128xf32>
    %84 = vector.broadcast %83 : vector<1x128xf32> to vector<2x128xf32>
    %85 = arith.cmpf olt, %75, %84 : vector<2x128xf32>
    %86 = vector.broadcast %1 : vector<1x128xf32> to vector<2x128xf32>
    %87 = arith.addf %75, %86 : vector<2x128xf32>
    %cst_29 = arith.constant 0.000000e+00 : f32
    %88 = vector.broadcast %cst_29 : f32 to vector<2x128xf32>
    %89 = arith.select %85, %87, %88 : vector<2x128xi1>, vector<2x128xf32>
    %90 = arith.addf %81, %89 : vector<2x128xf32>
    %c256 = arith.constant 256 : index
    %c0_30 = arith.constant 0 : index
    %91 = vector.load %arg3[%c256, %c0_30] : memref<1168x128xf32, #tpu.memory_space<vmem>>, vector<256x128xf32>
    %92 = tpu.concatenate %38, %90 in 1 : vector<2x128xf32>, vector<2x128xf32> -> vector<2x256xf32>
    %cst_31 = arith.constant dense<0.000000e+00> : vector<2x128xf32>
    %93 = tpu.matmul %92, %91, %cst_31 {dimension_numbers = #tpu.dot_dimension_numbers<[1], [0], [0], [1], [0, 0, 1, 1], [], []>} : vector<2x256xf32>, vector<256x128xf32>, vector<2x128xf32> -> vector<2x128xf32>
    %94 = vector.broadcast %2 : vector<1x128xf32> to vector<2x128xf32>
    %95 = arith.cmpf ogt, %93, %94 : vector<2x128xf32>
    %96 = vector.broadcast %2 : vector<1x128xf32> to vector<2x128xf32>
    %97 = arith.subf %93, %96 : vector<2x128xf32>
    %cst_32 = arith.constant 0.000000e+00 : f32
    %98 = vector.broadcast %cst_32 : f32 to vector<2x128xf32>
    %99 = arith.select %95, %97, %98 : vector<2x128xi1>, vector<2x128xf32>
    %cst_33 = arith.constant 0.000000e+00 : f32
    %100 = vector.broadcast %cst_33 : f32 to vector<1x128xf32>
    %101 = arith.subf %100, %2 : vector<1x128xf32>
    %102 = vector.broadcast %101 : vector<1x128xf32> to vector<2x128xf32>
    %103 = arith.cmpf olt, %93, %102 : vector<2x128xf32>
    %104 = vector.broadcast %2 : vector<1x128xf32> to vector<2x128xf32>
    %105 = arith.addf %93, %104 : vector<2x128xf32>
    %cst_34 = arith.constant 0.000000e+00 : f32
    %106 = vector.broadcast %cst_34 : f32 to vector<2x128xf32>
    %107 = arith.select %103, %105, %106 : vector<2x128xi1>, vector<2x128xf32>
    %108 = arith.addf %99, %107 : vector<2x128xf32>
    %c512 = arith.constant 512 : index
    %c0_35 = arith.constant 0 : index
    %109 = vector.load %arg3[%c512, %c0_35] : memref<1168x128xf32, #tpu.memory_space<vmem>>, vector<256x128xf32>
    %110 = tpu.concatenate %55, %108 in 1 : vector<2x128xf32>, vector<2x128xf32> -> vector<2x256xf32>
    %cst_36 = arith.constant dense<0.000000e+00> : vector<2x128xf32>
    %111 = tpu.matmul %110, %109, %cst_36 {dimension_numbers = #tpu.dot_dimension_numbers<[1], [0], [0], [1], [0, 0, 1, 1], [], []>} : vector<2x256xf32>, vector<256x128xf32>, vector<2x128xf32> -> vector<2x128xf32>
    %112 = vector.broadcast %3 : vector<1x128xf32> to vector<2x128xf32>
    %113 = arith.cmpf ogt, %111, %112 : vector<2x128xf32>
    %114 = vector.broadcast %3 : vector<1x128xf32> to vector<2x128xf32>
    %115 = arith.subf %111, %114 : vector<2x128xf32>
    %cst_37 = arith.constant 0.000000e+00 : f32
    %116 = vector.broadcast %cst_37 : f32 to vector<2x128xf32>
    %117 = arith.select %113, %115, %116 : vector<2x128xi1>, vector<2x128xf32>
    %cst_38 = arith.constant 0.000000e+00 : f32
    %118 = vector.broadcast %cst_38 : f32 to vector<1x128xf32>
    %119 = arith.subf %118, %3 : vector<1x128xf32>
    %120 = vector.broadcast %119 : vector<1x128xf32> to vector<2x128xf32>
    %121 = arith.cmpf olt, %111, %120 : vector<2x128xf32>
    %122 = vector.broadcast %3 : vector<1x128xf32> to vector<2x128xf32>
    %123 = arith.addf %111, %122 : vector<2x128xf32>
    %cst_39 = arith.constant 0.000000e+00 : f32
    %124 = vector.broadcast %cst_39 : f32 to vector<2x128xf32>
    %125 = arith.select %121, %123, %124 : vector<2x128xi1>, vector<2x128xf32>
    %126 = arith.addf %117, %125 : vector<2x128xf32>
    %c768 = arith.constant 768 : index
    %c0_40 = arith.constant 0 : index
    %127 = vector.load %arg3[%c768, %c0_40] : memref<1168x128xf32, #tpu.memory_space<vmem>>, vector<256x128xf32>
    %128 = tpu.concatenate %72, %126 in 1 : vector<2x128xf32>, vector<2x128xf32> -> vector<2x256xf32>
    %cst_41 = arith.constant dense<0.000000e+00> : vector<2x128xf32>
    %129 = tpu.matmul %128, %127, %cst_41 {dimension_numbers = #tpu.dot_dimension_numbers<[1], [0], [0], [1], [0, 0, 1, 1], [], []>} : vector<2x256xf32>, vector<256x128xf32>, vector<2x128xf32> -> vector<2x128xf32>
    %130 = vector.broadcast %4 : vector<1x128xf32> to vector<2x128xf32>
    %131 = arith.cmpf ogt, %129, %130 : vector<2x128xf32>
    %132 = vector.broadcast %4 : vector<1x128xf32> to vector<2x128xf32>
    %133 = arith.subf %129, %132 : vector<2x128xf32>
    %cst_42 = arith.constant 0.000000e+00 : f32
    %134 = vector.broadcast %cst_42 : f32 to vector<2x128xf32>
    %135 = arith.select %131, %133, %134 : vector<2x128xi1>, vector<2x128xf32>
    %cst_43 = arith.constant 0.000000e+00 : f32
    %136 = vector.broadcast %cst_43 : f32 to vector<1x128xf32>
    %137 = arith.subf %136, %4 : vector<1x128xf32>
    %138 = vector.broadcast %137 : vector<1x128xf32> to vector<2x128xf32>
    %139 = arith.cmpf olt, %129, %138 : vector<2x128xf32>
    %140 = vector.broadcast %4 : vector<1x128xf32> to vector<2x128xf32>
    %141 = arith.addf %129, %140 : vector<2x128xf32>
    %cst_44 = arith.constant 0.000000e+00 : f32
    %142 = vector.broadcast %cst_44 : f32 to vector<2x128xf32>
    %143 = arith.select %139, %141, %142 : vector<2x128xi1>, vector<2x128xf32>
    %144 = arith.addf %135, %143 : vector<2x128xf32>
    %c0_45 = arith.constant 0 : index
    %c0_46 = arith.constant 0 : index
    %145 = vector.load %arg3[%c0_45, %c0_46] : memref<1168x128xf32, #tpu.memory_space<vmem>>, vector<256x128xf32>
    %146 = tpu.concatenate %90, %0 in 1 : vector<2x128xf32>, vector<2x128xf32> -> vector<2x256xf32>
    %cst_47 = arith.constant dense<0.000000e+00> : vector<2x128xf32>
    %147 = tpu.matmul %146, %145, %cst_47 {dimension_numbers = #tpu.dot_dimension_numbers<[1], [0], [0], [1], [0, 0, 1, 1], [], []>} : vector<2x256xf32>, vector<256x128xf32>, vector<2x128xf32> -> vector<2x128xf32>
    %148 = vector.broadcast %1 : vector<1x128xf32> to vector<2x128xf32>
    %149 = arith.cmpf ogt, %147, %148 : vector<2x128xf32>
    %150 = vector.broadcast %1 : vector<1x128xf32> to vector<2x128xf32>
    %151 = arith.subf %147, %150 : vector<2x128xf32>
    %cst_48 = arith.constant 0.000000e+00 : f32
    %152 = vector.broadcast %cst_48 : f32 to vector<2x128xf32>
    %153 = arith.select %149, %151, %152 : vector<2x128xi1>, vector<2x128xf32>
    %cst_49 = arith.constant 0.000000e+00 : f32
    %154 = vector.broadcast %cst_49 : f32 to vector<1x128xf32>
    %155 = arith.subf %154, %1 : vector<1x128xf32>
    %156 = vector.broadcast %155 : vector<1x128xf32> to vector<2x128xf32>
    %157 = arith.cmpf olt, %147, %156 : vector<2x128xf32>
    %158 = vector.broadcast %1 : vector<1x128xf32> to vector<2x128xf32>
    %159 = arith.addf %147, %158 : vector<2x128xf32>
    %cst_50 = arith.constant 0.000000e+00 : f32
    %160 = vector.broadcast %cst_50 : f32 to vector<2x128xf32>
    %161 = arith.select %157, %159, %160 : vector<2x128xi1>, vector<2x128xf32>
    %162 = arith.addf %153, %161 : vector<2x128xf32>
    %c256_51 = arith.constant 256 : index
    %c0_52 = arith.constant 0 : index
    %163 = vector.load %arg3[%c256_51, %c0_52] : memref<1168x128xf32, #tpu.memory_space<vmem>>, vector<256x128xf32>
    %164 = tpu.concatenate %108, %162 in 1 : vector<2x128xf32>, vector<2x128xf32> -> vector<2x256xf32>
    %cst_53 = arith.constant dense<0.000000e+00> : vector<2x128xf32>
    %165 = tpu.matmul %164, %163, %cst_53 {dimension_numbers = #tpu.dot_dimension_numbers<[1], [0], [0], [1], [0, 0, 1, 1], [], []>} : vector<2x256xf32>, vector<256x128xf32>, vector<2x128xf32> -> vector<2x128xf32>
    %166 = vector.broadcast %2 : vector<1x128xf32> to vector<2x128xf32>
    %167 = arith.cmpf ogt, %165, %166 : vector<2x128xf32>
    %168 = vector.broadcast %2 : vector<1x128xf32> to vector<2x128xf32>
    %169 = arith.subf %165, %168 : vector<2x128xf32>
    %cst_54 = arith.constant 0.000000e+00 : f32
    %170 = vector.broadcast %cst_54 : f32 to vector<2x128xf32>
    %171 = arith.select %167, %169, %170 : vector<2x128xi1>, vector<2x128xf32>
    %cst_55 = arith.constant 0.000000e+00 : f32
    %172 = vector.broadcast %cst_55 : f32 to vector<1x128xf32>
    %173 = arith.subf %172, %2 : vector<1x128xf32>
    %174 = vector.broadcast %173 : vector<1x128xf32> to vector<2x128xf32>
    %175 = arith.cmpf olt, %165, %174 : vector<2x128xf32>
    %176 = vector.broadcast %2 : vector<1x128xf32> to vector<2x128xf32>
    %177 = arith.addf %165, %176 : vector<2x128xf32>
    %cst_56 = arith.constant 0.000000e+00 : f32
    %178 = vector.broadcast %cst_56 : f32 to vector<2x128xf32>
    %179 = arith.select %175, %177, %178 : vector<2x128xi1>, vector<2x128xf32>
    %180 = arith.addf %171, %179 : vector<2x128xf32>
    %c512_57 = arith.constant 512 : index
    %c0_58 = arith.constant 0 : index
    %181 = vector.load %arg3[%c512_57, %c0_58] : memref<1168x128xf32, #tpu.memory_space<vmem>>, vector<256x128xf32>
    %182 = tpu.concatenate %126, %180 in 1 : vector<2x128xf32>, vector<2x128xf32> -> vector<2x256xf32>
    %cst_59 = arith.constant dense<0.000000e+00> : vector<2x128xf32>
    %183 = tpu.matmul %182, %181, %cst_59 {dimension_numbers = #tpu.dot_dimension_numbers<[1], [0], [0], [1], [0, 0, 1, 1], [], []>} : vector<2x256xf32>, vector<256x128xf32>, vector<2x128xf32> -> vector<2x128xf32>
    %184 = vector.broadcast %3 : vector<1x128xf32> to vector<2x128xf32>
    %185 = arith.cmpf ogt, %183, %184 : vector<2x128xf32>
    %186 = vector.broadcast %3 : vector<1x128xf32> to vector<2x128xf32>
    %187 = arith.subf %183, %186 : vector<2x128xf32>
    %cst_60 = arith.constant 0.000000e+00 : f32
    %188 = vector.broadcast %cst_60 : f32 to vector<2x128xf32>
    %189 = arith.select %185, %187, %188 : vector<2x128xi1>, vector<2x128xf32>
    %cst_61 = arith.constant 0.000000e+00 : f32
    %190 = vector.broadcast %cst_61 : f32 to vector<1x128xf32>
    %191 = arith.subf %190, %3 : vector<1x128xf32>
    %192 = vector.broadcast %191 : vector<1x128xf32> to vector<2x128xf32>
    %193 = arith.cmpf olt, %183, %192 : vector<2x128xf32>
    %194 = vector.broadcast %3 : vector<1x128xf32> to vector<2x128xf32>
    %195 = arith.addf %183, %194 : vector<2x128xf32>
    %cst_62 = arith.constant 0.000000e+00 : f32
    %196 = vector.broadcast %cst_62 : f32 to vector<2x128xf32>
    %197 = arith.select %193, %195, %196 : vector<2x128xi1>, vector<2x128xf32>
    %198 = arith.addf %189, %197 : vector<2x128xf32>
    %c768_63 = arith.constant 768 : index
    %c0_64 = arith.constant 0 : index
    %199 = vector.load %arg3[%c768_63, %c0_64] : memref<1168x128xf32, #tpu.memory_space<vmem>>, vector<256x128xf32>
    %200 = tpu.concatenate %144, %198 in 1 : vector<2x128xf32>, vector<2x128xf32> -> vector<2x256xf32>
    %cst_65 = arith.constant dense<0.000000e+00> : vector<2x128xf32>
    %201 = tpu.matmul %200, %199, %cst_65 {dimension_numbers = #tpu.dot_dimension_numbers<[1], [0], [0], [1], [0, 0, 1, 1], [], []>} : vector<2x256xf32>, vector<256x128xf32>, vector<2x128xf32> -> vector<2x128xf32>
    %202 = vector.broadcast %4 : vector<1x128xf32> to vector<2x128xf32>
    %203 = arith.cmpf ogt, %201, %202 : vector<2x128xf32>
    %204 = vector.broadcast %4 : vector<1x128xf32> to vector<2x128xf32>
    %205 = arith.subf %201, %204 : vector<2x128xf32>
    %cst_66 = arith.constant 0.000000e+00 : f32
    %206 = vector.broadcast %cst_66 : f32 to vector<2x128xf32>
    %207 = arith.select %203, %205, %206 : vector<2x128xi1>, vector<2x128xf32>
    %cst_67 = arith.constant 0.000000e+00 : f32
    %208 = vector.broadcast %cst_67 : f32 to vector<1x128xf32>
    %209 = arith.subf %208, %4 : vector<1x128xf32>
    %210 = vector.broadcast %209 : vector<1x128xf32> to vector<2x128xf32>
    %211 = arith.cmpf olt, %201, %210 : vector<2x128xf32>
    %212 = vector.broadcast %4 : vector<1x128xf32> to vector<2x128xf32>
    %213 = arith.addf %201, %212 : vector<2x128xf32>
    %cst_68 = arith.constant 0.000000e+00 : f32
    %214 = vector.broadcast %cst_68 : f32 to vector<2x128xf32>
    %215 = arith.select %211, %213, %214 : vector<2x128xi1>, vector<2x128xf32>
    %216 = arith.addf %207, %215 : vector<2x128xf32>
    %c1024 = arith.constant 1024 : index
    %c0_69 = arith.constant 0 : index
    %217 = vector.load %arg3[%c1024, %c0_69] : memref<1168x128xf32, #tpu.memory_space<vmem>>, vector<128x16xf32>
    %c1165 = arith.constant 1165 : index
    %c0_70 = arith.constant 0 : index
    %218 = vector.load %arg3[%c1165, %c0_70] : memref<1168x128xf32, #tpu.memory_space<vmem>>, vector<1x16xf32>
    %cst_71 = arith.constant dense<0.000000e+00> : vector<2x16xf32>
    %219 = tpu.matmul %216, %217, %cst_71 {dimension_numbers = #tpu.dot_dimension_numbers<[1], [0], [0], [1], [0, 0, 1, 1], [], []>} : vector<2x128xf32>, vector<128x16xf32>, vector<2x16xf32> -> vector<2x16xf32>
    %220 = vector.broadcast %218 : vector<1x16xf32> to vector<2x16xf32>
    %221 = arith.addf %219, %220 : vector<2x16xf32>
    %222 = vector.extract_strided_slice %221 {offsets = [0, 0], sizes = [2, 8], strides = [1, 1]} : vector<2x16xf32> to vector<2x8xf32>
    %223 = vector.extract_strided_slice %221 {offsets = [0, 8], sizes = [2, 8], strides = [1, 1]} : vector<2x16xf32> to vector<2x8xf32>
    %c0_72 = arith.constant 0 : index
    %c0_73 = arith.constant 0 : index
    %224 = vector.load %arg2[%c0_72, %c0_73] : memref<2x8xf32, #tpu.memory_space<vmem>>, vector<2x8xf32>
    %cst_74 = arith.constant 5.000000e-01 : f32
    %225 = vector.broadcast %cst_74 : f32 to vector<2x8xf32>
    %226 = arith.mulf %223, %225 : vector<2x8xf32>
    %227 = math.exp %226 : vector<2x8xf32>
    %228 = arith.mulf %224, %227 : vector<2x8xf32>
    %229 = arith.addf %228, %222 : vector<2x8xf32>
    %c0_75 = arith.constant 0 : index
    %c0_76 = arith.constant 0 : index
    %230 = vector.load %arg5[%c0_75, %c0_76] : memref<2x8xf32, #tpu.memory_space<vmem>>, vector<2x8xf32>
    tpu.vector_store %arg5[%c0_75, %c0_76], %229 {strides = array<i32>} : memref<2x8xf32, #tpu.memory_space<vmem>>, vector<2x8xf32>,
    %c1152 = arith.constant 1152 : index
    %c0_77 = arith.constant 0 : index
    %231 = vector.load %arg3[%c1152, %c0_77] : memref<1168x128xf32, #tpu.memory_space<vmem>>, vector<8x128xf32>
    %c1164 = arith.constant 1164 : index
    %c0_78 = arith.constant 0 : index
    %232 = vector.load %arg3[%c1164, %c0_78] : memref<1168x128xf32, #tpu.memory_space<vmem>>, vector<1x128xf32>
    %cst_79 = arith.constant dense<0.000000e+00> : vector<2x128xf32>
    %233 = tpu.matmul %229, %231, %cst_79 {dimension_numbers = #tpu.dot_dimension_numbers<[1], [0], [0], [1], [0, 0, 1, 1], [], []>} : vector<2x8xf32>, vector<8x128xf32>, vector<2x128xf32> -> vector<2x128xf32>
    %234 = vector.broadcast %232 : vector<1x128xf32> to vector<2x128xf32>
    %235 = arith.addf %233, %234 : vector<2x128xf32>
    %c0_80 = arith.constant 0 : index
    %c0_81 = arith.constant 0 : index
    %236 = vector.load %arg4[%c0_80, %c0_81] : memref<2x128xf32, #tpu.memory_space<vmem>>, vector<2x128xf32>
    tpu.vector_store %arg4[%c0_80, %c0_81], %235 {strides = array<i32>} : memref<2x128xf32, #tpu.memory_space<vmem>>, vector<2x128xf32>,
    return
  }
  func.func @transform_0(%arg0: i32) -> (i32, i32) {
    %c0_i32 = arith.constant 0 : i32
    %c0_i32_0 = arith.constant 0 : i32
    %c0_i32_1 = arith.constant 0 : i32
    return %c0_i32, %c0_i32_0 : i32, i32
  }
  func.func @transform_1(%arg0: i32) -> (i32, i32) {
    %c0_i32 = arith.constant 0 : i32
    %c0_i32_0 = arith.constant 0 : i32
    %c0_i32_1 = arith.constant 0 : i32
    return %c0_i32, %c0_i32_0 : i32, i32
  }
  func.func @transform_2(%arg0: i32) -> (i32, i32) {
    %c0_i32 = arith.constant 0 : i32
    %c0_i32_0 = arith.constant 0 : i32
    %c0_i32_1 = arith.constant 0 : i32
    return %c0_i32, %c0_i32_0 : i32, i32
  }
  func.func @transform_3(%arg0: i32) -> (i32, i32) {
    %c0_i32 = arith.constant 0 : i32
    %c0_i32_0 = arith.constant 0 : i32
    %c0_i32_1 = arith.constant 0 : i32
    return %c0_i32, %c0_i32_0 : i32, i32
  }
  func.func @transform_4(%arg0: i32) -> (i32, i32) {
    %c0_i32 = arith.constant 0 : i32
    %c0_i32_0 = arith.constant 0 : i32
    %c0_i32_1 = arith.constant 0 : i32
    return %c0_i32, %c0_i32_0 : i32, i32
  }
}

</mosaic_0001>

<bundles_post_ra>
// kernel: forward.1
= control target key start
LH: loop header
LB: loop body
LE: loop exit
PB: predicated region body
PF: predicated region fallthrough
CT: control target
= control target key end

     0   :  { %v3212_v1 = vmov 0.0   ;;  %vm1900_vm0 = vmmov 0   ;;  %s3189_s0 = inlined_call_operand.vmem [shape: f32[2,128], index: 0, kind: input, shape index: {}]   ;;  %s3190_s1 = inlined_call_operand.vmem [shape: f32[2,8], index: 1, kind: input, shape index: {}]   ;;  %s3191_s2 = inlined_call_operand.vmem [shape: f32[1168,128], index: 2, kind: input, shape index: {}]   ;;  %s3192_s3 = inlined_call_operand.vmem [shape: f32[2,128], index: 3, kind: output, shape index: {0}]   ;;  %s3193_s4 = inlined_call_operand.hbm [shape: f32[2,8], index: 4, kind: output, shape index: {1}]  }
   0x1   :  { %v1931_v0 = vld [vmem:[%s3191_s2 + $0xf8] sm:$0xff]  ;;  %1682 = vmatprep.subr.mxu0 %v3212_v1  ;;  %v1937_v2 = vld [vmem:[%s3191_s2 + $0xf0] sm:$0xff]  ;;  %1714 = vmatprep.mubr.msk.f32.mxu0 %vm1900_vm0, %v3212_v1  ;;  %v1947_v3 = vld [vmem:[%s3191_s2 + $0xe8] sm:$0xff] }
   0x2   :  { %3286 = vst [vmem:[#allocation5_spill] sm:$0xff] %v1931_v0  ;;  %1683 = vmatpush3.msra.mxu0 %v1931_v0  ;;  %1717 = vmatprep.subr.mxu1 %v3212_v1  ;;  %v1956_v4 = vld [vmem:[%s3191_s2 + $0xe0] sm:$0xff]  ;;  %v1961_v5 = vld [vmem:[%s3191_s2 + $0x1f8] sm:$0xff]  ;;  %v1968_v6 = vld [vmem:[%s3191_s2 + $0x1f0] sm:$0xff] }
   0x3   :  { %1684 = vmatprep.subr.mxu0 %v3212_v1  ;;  %1749 = vmatprep.mubr.msk.f32.mxu1 %vm1900_vm0, %v3212_v1  ;;  %v1974_v7 = vld [vmem:[%s3191_s2 + $0xd8] sm:$0xff]  ;;  %v1980_v8 = vld [vmem:[%s3191_s2 + $0x1e8] sm:$0xff]  ;;  %v1988_v9 = vld [vmem:[%s3191_s2 + $0xd0] sm:$0xff] }
   0x4   :  { %1685 = vmatpush3.msra.mxu0 %v1937_v2  ;;  %1718 = vmatpush3.msra.mxu1 %v1961_v5  ;;  %3287 = vst [vmem:[#allocation6_spill] sm:$0xff] %v1988_v9  ;;  %v1994_v10 = vld [vmem:[%s3191_s2 + $0x1e0] sm:$0xff] }
   0x5   :  { %1686 = vmatprep.subr.mxu0 %v3212_v1  ;;  %1719 = vmatprep.subr.mxu1 %v3212_v1 }
   0x6   :  { %1687 = vmatpush3.msra.mxu0 %v1947_v3  ;;  %1720 = vmatpush3.msra.mxu1 %v1968_v6 }
   0x7   :  { %1688 = vmatprep.subr.mxu0 %v3212_v1  ;;  %1721 = vmatprep.subr.mxu1 %v3212_v1 }
   0x8   :  { %1689 = vmatpush3.msra.mxu0 %v1956_v4  ;;  %1722 = vmatpush3.msra.mxu1 %v1980_v8 }
   0x9   :  { %1690 = vmatprep.subr.mxu0 %v3212_v1 }
   0xa   :  { %1691 = vmatpush3.msra.mxu0 %v1974_v7 }
   0xb   :  { %10 = vsyncpa [#allocation3], 0  ;;  %1692 = vmatprep.subr.mxu0 %v3212_v1  ;;  %v2002_v11 = vld [vmem:[%s3191_s2 + $0xc8] sm:$0xff]  ;;  %1723 = vmatprep.subr.mxu1 %v3212_v1  ;;  %v2008_v12 = vld [vmem:[%s3191_s2 + $0x1d8] sm:$0xff]  ;;  %v108_v47 = vlaneseq  ;;  %s1901_s13 = smov 120   ;;  %s1902_s16 = smov [#allocation2]  }
   0xc   :  { %3288 = vst [vmem:[#allocation7_spill] sm:$0xff] %v2002_v11  ;;  %1693 = vmatpush3.msra.mxu0 %v1988_v9  ;;  %1724 = vmatpush3.msra.mxu1 %v1994_v10  ;;  %v2016_v13 = vld [vmem:[%s3191_s2 + $0xc0] sm:$0xff]  ;;  %v2022_v14 = vld [vmem:[%s3191_s2 + $0x1d0] sm:$0xff]  ;;  %v2030_v15 = vld [vmem:[%s3191_s2 + $0xb8] sm:$0xff]  ;;  %s1302_s17 = sshll.u32 %s1902_s16, 4  ;;  %s1303_s17 = int_to_ptr.vmem [resolvable:$true] %s1302_s17 }
   0xd   :  { %1694 = vmatprep.subr.mxu0 %v3212_v1  ;;  %3289 = vst [vmem:[#allocation8_spill] sm:$0xff] %v2016_v13  ;;  %1725 = vmatprep.subr.mxu1 %v3212_v1  ;;  %3290 = vst [vmem:[#allocation9_spill] sm:$0xff] %v2030_v15  ;;  %v2036_v16 = vld [vmem:[%s3191_s2 + $0x1c8] sm:$0xff]  ;;  %v2044_v17 = vld [vmem:[%s3191_s2 + $0xb0] sm:$0xff]  ;;  %v109_v48 = vshrl.u32 %v108_v47, 7  ;;  %s1877_s18 = scalar_lea.vmem %s1303_s17, 32  ;;  %p1882_p1 = scmp.lt.s32.totalorder %s1303_s17, %s1303_s17 }
   0xe   :  { %1695 = vmatpush3.msra.mxu0 %v2002_v11  ;;  %1726 = vmatpush3.msra.mxu1 %v2008_v12  ;;  %3291 = vst [vmem:[#allocation10_spill] sm:$0xff] %v2044_v17  ;;  %v2050_v18 = vld [vmem:[%s3191_s2 + $0x1c0] sm:$0xff]  ;;  %v2058_v19 = vld [vmem:[%s3191_s2 + $0xa8] sm:$0xff]  ;;  %v2064_v20 = vld [vmem:[%s3191_s2 + $0x1b8] sm:$0xff]  ;;  %p1878_p0 = scmp.ne.s32.totalorder %s1303_s17, %s1877_s18  ;;  %p1883_p2 = scmp.lt.s32.totalorder %s1877_s18, %s1877_s18 }
   0xf   :  { %1696 = vmatprep.subr.mxu0 %v3212_v1  ;;  %1727 = vmatprep.subr.mxu1 %v3212_v1  ;;  %3292 = vst [vmem:[#allocation11_spill] sm:$0xff] %v2058_v19  ;;  %v2072_v21 = vld [vmem:[%s3191_s2 + $0xa0] sm:$0xff]  ;;  %v2078_v22 = vld [vmem:[%s3191_s2 + $0x1b0] sm:$0xff]  ;;  %v2086_v23 = vld [vmem:[%s3191_s2 + $0x98] sm:$0xff]  ;;  %v2260_v50 = vsub.s32 0, %v109_v48 }
  0x10   :  { %1697 = vmatpush3.msra.mxu0 %v2016_v13  ;;  %1728 = vmatpush3.msra.mxu1 %v2022_v14  ;;  %3293 = vst [vmem:[#allocation12_spill] sm:$0xff] %v2072_v21  ;;  %3294 = vst [vmem:[#allocation13_spill] sm:$0xff] %v2078_v22  ;;  %v2092_v24 = vld [vmem:[%s3191_s2 + $0x1a8] sm:$0xff]  ;;  %v2100_v25 = vld [vmem:[%s3191_s2 + $0x90] sm:$0xff]  ;;  %p1884_p3 = por %p1883_p2, %p1882_p1 }
  0x11   :  { %1698 = vmatprep.subr.mxu0 %v3212_v1  ;;  %1729 = vmatprep.subr.mxu1 %v3212_v1  ;;  %3295 = vst [vmem:[#allocation14_spill] sm:$0xff] %v2086_v23  ;;  %3296 = vst [vmem:[#allocation15_spill] sm:$0xff] %v2092_v24  ;;  %v2106_v26 = vld [vmem:[%s3191_s2 + $0x1a0] sm:$0xff]  ;;  %v2114_v27 = vld [vmem:[%s3191_s2 + $0x88] sm:$0xff] }
  0x12   :  { %1699 = vmatpush3.msra.mxu0 %v2030_v15  ;;  %1730 = vmatpush3.msra.mxu1 %v2036_v16  ;;  %3297 = vst [vmem:[#allocation16_spill] sm:$0xff] %v2100_v25  ;;  %3298 = vst [vmem:[#allocation17_spill] sm:$0xff] %v2106_v26  ;;  %v2120_v28 = vld [vmem:[%s3191_s2 + $0x198] sm:$0xff]  ;;  %v2128_v29 = vld [vmem:[%s3191_s2 + $0x80] sm:$0xff]  ;;  %p1885_p4 = pnand %p1884_p3, %p1878_p0 }
  0x13   :  { %1700 = vmatprep.subr.mxu0 %v3212_v1  ;;  %1731 = vmatprep.subr.mxu1 %v3212_v1  ;;  %3299 = vst [vmem:[#allocation18_spill] sm:$0xff] %v2114_v27  ;;  %3300 = vst [vmem:[#allocation19_spill] sm:$0xff] %v2120_v28  ;;  %v2135_v30 = vld [vmem:[%s3189_s0] sm:$0x3]  ;;  %v2148_v31 = vld [vmem:[%s3191_s2 + $0x190] sm:$0xff] }
  0x14   :  { %1701 = vmatpush3.msra.mxu0 %v2044_v17  ;;  %1732 = vmatpush3.msra.mxu1 %v2050_v18  ;;  %3301 = vst [vmem:[#allocation20_spill] sm:$0xff] %v2128_v29  ;;  %3302 = vst [vmem:[#allocation21_spill] sm:$0xff] %v2148_v31  ;;  %v2155_v32 = vld [vmem:[%s3191_s2 + $0x188] sm:$0xff]  ;;  %v2160_v33 = vld [vmem:[%s3191_s2 + $0x180] sm:$0xff] }
  0x15   :  { %1702 = vmatprep.subr.mxu0 %v3212_v1  ;;  %1733 = vmatprep.subr.mxu1 %v3212_v1  ;;  %3303 = vst [vmem:[#allocation22_spill] sm:$0xff] %v2155_v32  ;;  %3304 = vst [vmem:[#allocation23_spill] sm:$0xff] %v2160_v33  ;;  %v2168_v34 = vld [vmem:[%s3191_s2 + $0x2f8] sm:$0xff]  ;;  %v2173_v35 = vld [vmem:[%s3191_s2 + $0x2f0] sm:$0xff] }
  0x16   :  { %1703 = vmatpush3.msra.mxu0 %v2058_v19  ;;  %1734 = vmatpush3.msra.mxu1 %v2064_v20  ;;  %3305 = vst [vmem:[#allocation24_spill] sm:$0xff] %v2168_v34  ;;  %v2181_v36 = vld [vmem:[%s3191_s2 + $0x2e8] sm:$0xff]  ;;  %v2188_v37 = vld [vmem:[%s3191_s2 + $0x2e0] sm:$0xff]  ;;  %v2195_v38 = vld [vmem:[%s3191_s2 + $0x2d8] sm:$0xff] }
  0x17   :  { %1704 = vmatprep.subr.mxu0 %v3212_v1  ;;  %1735 = vmatprep.subr.mxu1 %v3212_v1  ;;  %v2202_v39 = vld [vmem:[%s3191_s2 + $0x2d0] sm:$0xff]  ;;  %v2209_v40 = vld [vmem:[%s3191_s2 + $0x2c8] sm:$0xff]  ;;  %v2216_v41 = vld [vmem:[%s3191_s2 + $0x2c0] sm:$0xff] }
  0x18   :  { %1705 = vmatpush3.msra.mxu0 %v2072_v21  ;;  %1736 = vmatpush3.msra.mxu1 %v2078_v22  ;;  %v2223_v42 = vld [vmem:[%s3191_s2 + $0x2b8] sm:$0xff]  ;;  %v2230_v43 = vld [vmem:[%s3191_s2 + $0x2b0] sm:$0xff]  ;;  %v2237_v44 = vld [vmem:[%s3191_s2 + $0x2a8] sm:$0xff] }
  0x19   :  { %1706 = vmatprep.subr.mxu0 %v3212_v1  ;;  %1737 = vmatprep.subr.mxu1 %v3212_v1  ;;  %v2244_v45 = vld [vmem:[%s3191_s2 + $0x2a0] sm:$0xff]  ;;  %v2251_v46 = vld [vmem:[%s3191_s2 + $0x298] sm:$0xff]  ;;  %v18_v49 = vld [vmem:[%s3191_s2 + $0x488] sm:$0x1] }
  0x1a   :  { %1707 = vmatpush3.msra.mxu0 %v2086_v23  ;;  %1738 = vmatpush3.msra.mxu1 %v2092_v24  ;;  %v115_v51 = vsub.f32 0.0, %v18_v49  ;;  %v2263_v52 = vrot.slane %v18_v49, %v2260_v50  ;;  %v2280_v61 = vld [vmem:[%s3191_s2 + $0x290] sm:$0xff]  ;;  %v2287_v62 = vld [vmem:[%s3191_s2 + $0x288] sm:$0xff]  ;;  %v2294_v63 = vld [vmem:[%s3191_s2 + $0x280] sm:$0xff] }
  0x1b   :  { %1708 = vmatprep.subr.mxu0 %v3212_v1  ;;  %1739 = vmatprep.subr.mxu1 %v3212_v1  ;;  %v2301_v47 = vld [vmem:[%s3191_s2 + $0x3f8] sm:$0xff]  ;;  %v2306_v48 = vld [vmem:[%s3191_s2 + $0x3f0] sm:$0xff]  ;;  %v2313_v49 = vld [vmem:[%s3191_s2 + $0x3e8] sm:$0xff] }
  0x1c   :  { %1709 = vmatpush3.msra.mxu0 %v2100_v25  ;;  %1740 = vmatpush3.msra.mxu1 %v2106_v26  ;;  %3306 = vst [vmem:[#allocation25_spill] sm:$0xff] %v2263_v52  ;;  %v2266_v53 = vrot.slane %v115_v51, %v2260_v50  ;;  %3308 = vst [vmem:[#allocation27_spill] sm:$0xff] %v2301_v47  ;;  %v2320_v51 = vld [vmem:[%s3191_s2 + $0x3e0] sm:$0xff] }
  0x1d   :  { %1710 = vmatprep.subr.mxu0 %v3212_v1  ;;  %1741 = vmatprep.subr.mxu1 %v3212_v1  ;;  %3309 = vst [vmem:[#allocation28_spill] sm:$0xff] %v2306_v48  ;;  %3310 = vst [vmem:[#allocation29_spill] sm:$0xff] %v2313_v49 }
  0x1e   :  { %1711 = vmatpush3.msra.mxu0 %v2114_v27  ;;  %1742 = vmatpush3.msra.mxu1 %v2120_v28  ;;  %3307 = vst [vmem:[#allocation26_spill] sm:$0xff] %v2266_v53  ;;  %3311 = vst [vmem:[#allocation30_spill] sm:$0xff] %v2320_v51 }
  0x1f   :  { %1712 = vmatprep.subr.mxu0 %v3212_v1  ;;  %1743 = vmatprep.subr.mxu1 %v3212_v1 }
  0x20   :  { %1713 = vmatpush3.msra.mxu0 %v2128_v29  ;;  %1744 = vmatpush3.msra.mxu1 %v2148_v31 }
  0x21   :  { %1715 = vmatmul.mubr.f32.vlgmr.msra.gmra.mxu0 %v2135_v30  ;;  %1752 = vmatprep.subr.mxu0 %v3212_v1 }
  0x22   :  { %1784 = vmatprep.mubr.msk.f32.mxu0 %vm1900_vm0, %v3212_v1  ;;  %1745 = vmatprep.subr.mxu1 %v3212_v1 }
  0x23   :  { %1746 = vmatpush3.msra.mxu1 %v2155_v32  ;;  %1753 = vmatpush3.msra.mxu0 %v2168_v34 }
  0x24   :  { %1747 = vmatprep.subr.mxu1 %v3212_v1  ;;  %1754 = vmatprep.subr.mxu0 %v3212_v1 }
  0x25   :  { %1748 = vmatpush3.msra.mxu1 %v2160_v33  ;;  %1755 = vmatpush3.msra.mxu0 %v2173_v35 }
  0x26   :  { %1787 = vmatprep.subr.mxu1 %v3212_v1  ;;  %1756 = vmatprep.subr.mxu0 %v3212_v1 }
  0x27   :  { %1757 = vmatpush3.msra.mxu0 %v2181_v36 }
  0x28   :  { %1758 = vmatprep.subr.mxu0 %v3212_v1 }
  0x29   :  { %1759 = vmatpush3.msra.mxu0 %v2188_v37 }
  0x2a   :  { %1760 = vmatprep.subr.mxu0 %v3212_v1 }
  0x2b   :  { %1761 = vmatpush3.msra.mxu0 %v2195_v38 }
  0x2c   :  { %1762 = vmatprep.subr.mxu0 %v3212_v1 }
  0x2d   :  { %1763 = vmatpush3.msra.mxu0 %v2202_v39 }
  0x2e   :  { %1764 = vmatprep.subr.mxu0 %v3212_v1 }
  0x2f   :  { %1765 = vmatpush3.msra.mxu0 %v2209_v40 }
  0x30   :  { %1766 = vmatprep.subr.mxu0 %v3212_v1 }
  0x31   :  { %1767 = vmatpush3.msra.mxu0 %v2216_v41 }
  0x32   :  { %1768 = vmatprep.subr.mxu0 %v3212_v1 }
  0x33   :  { %1769 = vmatpush3.msra.mxu0 %v2223_v42 }
  0x34   :  { %1770 = vmatprep.subr.mxu0 %v3212_v1 }
  0x35   :  { %1771 = vmatpush3.msra.mxu0 %v2230_v43 }
  0x36   :  { %1772 = vmatprep.subr.mxu0 %v3212_v1 }
  0x37   :  { %1773 = vmatpush3.msra.mxu0 %v2237_v44 }
  0x38   :  { %1774 = vmatprep.subr.mxu0 %v3212_v1 }
  0x39   :  { %1775 = vmatpush3.msra.mxu0 %v2244_v45 }
  0x3a   :  { %1776 = vmatprep.subr.mxu0 %v3212_v1 }
  0x3b   :  { %1777 = vmatpush3.msra.mxu0 %v2251_v46 }
  0x3c   :  { %1778 = vmatprep.subr.mxu0 %v3212_v1 }
  0x3d   :  { %1779 = vmatpush3.msra.mxu0 %v2280_v61 }
  0x3e   :  { %1780 = vmatprep.subr.mxu0 %v3212_v1 }
  0x3f   :  { %1781 = vmatpush3.msra.mxu0 %v2287_v62 }
  0x40   :  { %1782 = vmatprep.subr.mxu0 %v3212_v1 }
  0x41   :  { %1783 = vmatpush3.msra.mxu0 %v2294_v63 }
  0x42   :  { %1383 = vmatprep.subr.mxu0 %v1931_v0 }
  0xe1   :  { %v104_v54 = vpop.f32.mrf.mxu0 }
  0xe2   :  { %vm112_vm1 = vcmp.gt.f32.partialorder %v104_v54, %v2263_v52  ;;  %v113_v55 = vsub.f32 %v104_v54, %v2263_v52  ;;  %vm120_vm2 = vcmp.lt.f32.partialorder %v104_v54, %v2266_v53  ;;  %v121_v56 = vadd.f32 %v2263_v52, %v104_v54  ;;  %v2327_v54 = vld [vmem:[%s3191_s2 + $0x3d8] sm:$0xff] }
  0xe3   :  { %v1716_v57 = vpop.f32.mrf.mxu0  ;;  %3312 = vst [vmem:[#allocation31_spill] sm:$0xff] %v2327_v54 }
  0xe4   :  { %v114_v58 = vsel %vm112_vm1, %v113_v55, 0.0  ;;  %v122_v59 = vsel %vm120_vm2, %v121_v56, 0.0  ;;  %v2334_v55 = vld [vmem:[%s3191_s2 + $0x3d0] sm:$0xff]  ;;  %v2341_v56 = vld [vmem:[%s3191_s2 + $0x3c8] sm:$0xff]  ;;  %v2348_v57 = vld [vmem:[%s3191_s2 + $0x3c0] sm:$0xff] }
  0xe5   :  { %v2272_v60 = vadd.f32 %v122_v59, %v114_v58  ;;  %3313 = vst [vmem:[#allocation32_spill] sm:$0xff] %v2334_v55  ;;  %3314 = vst [vmem:[#allocation33_spill] sm:$0xff] %v2341_v56  ;;  %v2355_v58 = vld [vmem:[%s3191_s2 + $0x3b8] sm:$0xff]  ;;  %v2362_v59 = vld [vmem:[%s3191_s2 + $0x3b0] sm:$0xff] }
  0xe6   :  { %3315 = vst [vmem:[#allocation34_spill] sm:$0xff] %v2348_v57  ;;  %3316 = vst [vmem:[#allocation35_spill] sm:$0xff] %v2355_v58 }
  0xe7   :  { %1750 = vmatmul.mubr.f32.vlgmr.msra.gmra.mxu1 %v2272_v60  ;;  %3317 = vst [vmem:[#allocation36_spill] sm:$0xff] %v2362_v59 }
  0xe8   :  { %1819 = vmatprep.mubr.msk.f32.mxu1 %vm1900_vm0, %v3212_v1  ;;  %1788 = vmatpush3.msra.mxu1 %v2301_v47 }
  0xe9   :  { %1789 = vmatprep.subr.mxu1 %v3212_v1 }
  0xea   :  { %1790 = vmatpush3.msra.mxu1 %v2306_v48 }
  0xeb   :  { %1791 = vmatprep.subr.mxu1 %v3212_v1 }
  0xec   :  { %1792 = vmatpush3.msra.mxu1 %v2313_v49 }
  0xed   :  { %1793 = vmatprep.subr.mxu1 %v3212_v1 }
  0xee   :  { %1794 = vmatpush3.msra.mxu1 %v2320_v51 }
  0xef   :  { %1795 = vmatprep.subr.mxu1 %v3212_v1 }
  0xf0   :  { %1796 = vmatpush3.msra.mxu1 %v2327_v54 }
  0xf1   :  { %1797 = vmatprep.subr.mxu1 %v3212_v1 }
  0xf2   :  { %1798 = vmatpush3.msra.mxu1 %v2334_v55 }
  0xf3   :  { %1799 = vmatprep.subr.mxu1 %v3212_v1 }
  0xf4   :  { %1800 = vmatpush3.msra.mxu1 %v2341_v56  ;;  %v2369_v56 = vld [vmem:[%s3191_s2 + $0x3a8] sm:$0xff] }
  0xf5   :  { %1801 = vmatprep.subr.mxu1 %v3212_v1  ;;  %3318 = vst [vmem:[#allocation37_spill] sm:$0xff] %v2369_v56 }
  0xf6   :  { %1802 = vmatpush3.msra.mxu1 %v2348_v57  ;;  %v2376_v57 = vld [vmem:[%s3191_s2 + $0x3a0] sm:$0xff] }
  0xf7   :  { %1803 = vmatprep.subr.mxu1 %v3212_v1  ;;  %3319 = vst [vmem:[#allocation38_spill] sm:$0xff] %v2376_v57 }
  0xf8   :  { %1804 = vmatpush3.msra.mxu1 %v2355_v58  ;;  %v2383_v58 = vld [vmem:[%s3191_s2 + $0x398] sm:$0xff] }
  0xf9   :  { %1805 = vmatprep.subr.mxu1 %v3212_v1  ;;  %3320 = vst [vmem:[#allocation39_spill] sm:$0xff] %v2383_v58 }
  0xfa   :  { %1806 = vmatpush3.msra.mxu1 %v2362_v59  ;;  %v19_v59 = vld [vmem:[%s3191_s2 + $0x489] sm:$0x1] }
  0xfb   :  { %1807 = vmatprep.subr.mxu1 %v3212_v1  ;;  %v2393_v55 = vrot.slane %v19_v59, %v2260_v50 }
  0xfc   :  { %1808 = vmatpush3.msra.mxu1 %v2369_v56  ;;  %v217_v56 = vsub.f32 0.0, %v19_v59  ;;  %v2407_v59 = vld [vmem:[%s3191_s2 + $0x78] sm:$0xff] }
  0xfd   :  { %1809 = vmatprep.subr.mxu1 %v3212_v1 }
  0xfe   :  { %1810 = vmatpush3.msra.mxu1 %v2376_v57  ;;  %v2396_v54 = vrot.slane %v217_v56, %v2260_v50  ;;  %v2413_v56 = vld [vmem:[%s3191_s2 + $0x70] sm:$0xff] }
  0xff   :  { %1811 = vmatprep.subr.mxu1 %v3212_v1 }
 0x100   :  { %1812 = vmatpush3.msra.mxu1 %v2383_v58 }
 0x101   :  { %1813 = vmatprep.subr.mxu1 %v3212_v1 }
 0x1a7   :  { %v206_v51 = vpop.f32.mrf.mxu1 }
 0x1a8   :  { %vm214_vm3 = vcmp.gt.f32.partialorder %v206_v51, %v2393_v55  ;;  %v215_v57 = vsub.f32 %v206_v51, %v2393_v55  ;;  %vm222_vm4 = vcmp.lt.f32.partialorder %v206_v51, %v2396_v54  ;;  %v223_v1 = vadd.f32 %v2393_v55, %v206_v51  ;;  %v2442_v51 = vld [vmem:[%s3191_s2 + $0x50] sm:$0xff] }
 0x1a9   :  { %v1751_v58 = vpop.f32.mrf.mxu1 }
 0x1aa   :  { %v216_v49 = vsel %vm214_vm3, %v215_v57, 0.0  ;;  %v224_v48 = vsel %vm222_vm4, %v223_v1, 0.0  ;;  %v2421_v1 = vld [vmem:[%s3191_s2 + $0x68] sm:$0xff]  ;;  %v2456_v58 = vld [vmem:[%s3191_s2 + $0x40] sm:$0xff] }
 0x1ab   :  { %v2402_v0 = vadd.f32 %v224_v48, %v216_v49  ;;  %v2428_v48 = vld [vmem:[%s3191_s2 + $0x60] sm:$0xff]  ;;  %v2435_v49 = vld [vmem:[%s3191_s2 + $0x58] sm:$0xff]  ;;  %v2449_v57 = vld [vmem:[%s3191_s2 + $0x48] sm:$0xff] }
 0x1ad   :  { %1785 = vmatmul.mubr.f32.vlgmr.msra.gmra.mxu0 %v2402_v0 }
 0x1ae   :  { %1384 = vmatpush3.msra.mxu0 %v2407_v59  ;;  %510 = vmatprep.mubr.f32.mxu0 %v2135_v30 }
 0x1af   :  { %1385 = vmatprep.subr.mxu0 %v1937_v2 }
 0x1b0   :  { %1386 = vmatpush3.msra.mxu0 %v2413_v56 }
 0x1b1   :  { %1387 = vmatprep.subr.mxu0 %v1947_v3 }
 0x1b2   :  { %1388 = vmatpush3.msra.mxu0 %v2421_v1 }
 0x1b3   :  { %1389 = vmatprep.subr.mxu0 %v1956_v4 }
 0x1b4   :  { %1390 = vmatpush3.msra.mxu0 %v2428_v48 }
 0x1b5   :  { %1391 = vmatprep.subr.mxu0 %v1974_v7 }
 0x1b6   :  { %1392 = vmatpush3.msra.mxu0 %v2435_v49 }
 0x1b7   :  { %1393 = vmatprep.subr.mxu0 %v1988_v9  ;;  %v2463_v9 = vld [vmem:[%s3191_s2 + $0x38] sm:$0xff] }
 0x1b8   :  { %1394 = vmatpush3.msra.mxu0 %v2442_v51 }
 0x1b9   :  { %1395 = vmatprep.subr.mxu0 %v2002_v11  ;;  %v2470_v11 = vld [vmem:[%s3191_s2 + $0x30] sm:$0xff] }
 0x1ba   :  { %1396 = vmatpush3.msra.mxu0 %v2449_v57 }
 0x1bb   :  { %1397 = vmatprep.subr.mxu0 %v2016_v13  ;;  %v2477_v13 = vld [vmem:[%s3191_s2 + $0x28] sm:$0xff] }
 0x1bc   :  { %1398 = vmatpush3.msra.mxu0 %v2456_v58 }
 0x1bd   :  { %1399 = vmatprep.subr.mxu0 %v2030_v15  ;;  %v2484_v15 = vld [vmem:[%s3191_s2 + $0x20] sm:$0xff] }
 0x1be   :  { %1400 = vmatpush3.msra.mxu0 %v2463_v9  ;;  %3321 = vst [vmem:[#allocation40_spill] sm:$0xff] %v2484_v15 }
 0x1bf   :  { %1401 = vmatprep.subr.mxu0 %v2044_v17  ;;  %v2491_v17 = vld [vmem:[%s3191_s2 + $0x18] sm:$0xff] }
 0x1c0   :  { %1402 = vmatpush3.msra.mxu0 %v2470_v11  ;;  %3322 = vst [vmem:[#allocation41_spill] sm:$0xff] %v2491_v17 }
 0x1c1   :  { %1403 = vmatprep.subr.mxu0 %v2058_v19  ;;  %v2498_v19 = vld [vmem:[%s3191_s2 + $0x10] sm:$0xff] }
 0x1c2   :  { %1404 = vmatpush3.msra.mxu0 %v2477_v13  ;;  %3323 = vst [vmem:[#allocation42_spill] sm:$0xff] %v2498_v19 }
 0x1c3   :  { %1405 = vmatprep.subr.mxu0 %v2072_v21  ;;  %v2505_v21 = vld [vmem:[%s3191_s2 + $0x8] sm:$0xff] }
 0x1c4   :  { %1406 = vmatpush3.msra.mxu0 %v2484_v15  ;;  %3324 = vst [vmem:[#allocation43_spill] sm:$0xff] %v2505_v21 }
 0x1c5   :  { %1407 = vmatprep.subr.mxu0 %v2086_v23  ;;  %v2512_v23 = vld [vmem:[%s3191_s2] sm:$0xff] }
 0x1c6   :  { %1408 = vmatpush3.msra.mxu0 %v2491_v17  ;;  %3325 = vst [vmem:[#allocation44_spill] sm:$0xff] %v2512_v23 }
 0x1c7   :  { %1409 = vmatprep.subr.mxu0 %v2100_v25 }
 0x1c8   :  { %1410 = vmatpush3.msra.mxu0 %v2498_v19  ;;  %v2522_v19 = vld [vmem:[%s3191_s2 + $0x390] sm:$0xff] }
 0x1c9   :  { %1411 = vmatprep.subr.mxu0 %v2114_v27  ;;  %3326 = vst [vmem:[#allocation45_spill] sm:$0xff] %v2522_v19  ;;  %1814 = vmatpush3.msra.mxu1 %v2522_v19  ;;  %v3327_v27 = vmov 0.0   ;;  %v20_v19 = vld [vmem:[%s3191_s2 + $0x48a] sm:$0x1] }
 0x1ca   :  { %1412 = vmatpush3.msra.mxu0 %v2505_v21  ;;  %1815 = vmatprep.subr.mxu1 %v3327_v27  ;;  %v2529_v21 = vld [vmem:[%s3191_s2 + $0x388] sm:$0xff] }
 0x1cb   :  { %1413 = vmatprep.subr.mxu0 %v2128_v29  ;;  %3328 = vst [vmem:[#allocation46_spill] sm:$0xff] %v2529_v21  ;;  %1816 = vmatpush3.msra.mxu1 %v2529_v21 }
 0x1cc   :  { %1414 = vmatpush3.msra.mxu0 %v2512_v23  ;;  %1817 = vmatprep.subr.mxu1 %v3327_v27  ;;  %v2544_v23 = vrot.slane %v20_v19, %v2260_v50 }
 0x1cd   :  { %511 = vmatmul.mubr.f32.vlgmr.msra.gmra.mxu0 %v2272_v60  ;;  %1453 = vmatprep.subr.mxu0 %v2168_v34  ;;  %v2534_v60 = vld [vmem:[%s3191_s2 + $0x380] sm:$0xff]  ;;  %v319_v34 = vsub.f32 0.0, %v20_v19  ;;  %v2558_v19 = vld [vmem:[%s3191_s2 + $0x178] sm:$0xff] }
 0x1ce   :  { %3329 = vst [vmem:[#allocation47_spill] sm:$0xff] %v2534_v60  ;;  %1818 = vmatpush3.msra.mxu1 %v2534_v60  ;;  %3330 = vst [vmem:[#allocation48_spill] sm:$0xff] %v2544_v23 }
 0x1cf   :  { %1418 = vmatprep.subr.mxu1 %v1961_v5  ;;  %v2547_v29 = vrot.slane %v319_v34, %v2260_v50  ;;  %3332 = vst [vmem:[#allocation50_spill] sm:$0xff] %v2558_v19  ;;  %v2564_v34 = vld [vmem:[%s3191_s2 + $0x170] sm:$0xff] }
 0x1d0   :  { %3333 = vst [vmem:[#allocation51_spill] sm:$0xff] %v2564_v34 }
 0x1d1   :  { %3331 = vst [vmem:[#allocation49_spill] sm:$0xff] %v2547_v29 }
 0x26d   :  { %v308_v25 = vpop.f32.mrf.mxu0 }
 0x26e   :  { %vm316_vm5 = vcmp.gt.f32.partialorder %v308_v25, %v2544_v23  ;;  %v317_v21 = vsub.f32 %v308_v25, %v2544_v23  ;;  %vm324_vm6 = vcmp.lt.f32.partialorder %v308_v25, %v2547_v29  ;;  %v325_v5 = vadd.f32 %v2544_v23, %v308_v25  ;;  %v2641_v25 = vld [vmem:[%s3191_s2 + $0x118] sm:$0xff] }
 0x26f   :  { %v1786_v60 = vpop.f32.mrf.mxu0  ;;  %3344 = vst [vmem:[#allocation62_spill] sm:$0xff] %v2641_v25 }
 0x270   :  { %v318_v27 = vsel %vm316_vm5, %v317_v21, 0.0  ;;  %v326_v17 = vsel %vm324_vm6, %v325_v5, 0.0  ;;  %v2578_v21 = vld [vmem:[%s3191_s2 + $0x160] sm:$0xff]  ;;  %v2655_v5 = vld [vmem:[%s3191_s2 + $0x108] sm:$0xff] }
 0x271   :  { %v2553_v15 = vadd.f32 %v326_v17, %v318_v27  ;;  %v2571_v17 = vld [vmem:[%s3191_s2 + $0x168] sm:$0xff]  ;;  %3335 = vst [vmem:[#allocation53_spill] sm:$0xff] %v2578_v21  ;;  %v2648_v27 = vld [vmem:[%s3191_s2 + $0x110] sm:$0xff]  ;;  %3346 = vst [vmem:[#allocation64_spill] sm:$0xff] %v2655_v5 }
 0x272   :  { %3334 = vst [vmem:[#allocation52_spill] sm:$0xff] %v2571_v17  ;;  %3345 = vst [vmem:[#allocation63_spill] sm:$0xff] %v2648_v27 }
 0x273   :  { %1820 = vmatmul.mubr.f32.vlgmr.msra.gmra.mxu1 %v2553_v15 }
 0x274   :  { %1419 = vmatpush3.msra.mxu1 %v2558_v19 }
 0x275   :  { %1420 = vmatprep.subr.mxu1 %v1968_v6  ;;  %v2585_v6 = vld [vmem:[%s3191_s2 + $0x158] sm:$0xff] }
 0x276   :  { %1421 = vmatpush3.msra.mxu1 %v2564_v34  ;;  %3336 = vst [vmem:[#allocation54_spill] sm:$0xff] %v2585_v6 }
 0x277   :  { %1422 = vmatprep.subr.mxu1 %v1980_v8  ;;  %v2592_v8 = vld [vmem:[%s3191_s2 + $0x150] sm:$0xff] }
 0x278   :  { %1423 = vmatpush3.msra.mxu1 %v2571_v17  ;;  %3337 = vst [vmem:[#allocation55_spill] sm:$0xff] %v2592_v8 }
 0x279   :  { %1424 = vmatprep.subr.mxu1 %v1994_v10  ;;  %v2599_v10 = vld [vmem:[%s3191_s2 + $0x148] sm:$0xff] }
 0x27a   :  { %1425 = vmatpush3.msra.mxu1 %v2578_v21  ;;  %3338 = vst [vmem:[#allocation56_spill] sm:$0xff] %v2599_v10  ;;  %v3355_v21 = vld [vmem:[#allocation30_spill] sm:$0xff] }
 0x27b   :  { %1426 = vmatprep.subr.mxu1 %v2008_v12  ;;  %v2606_v12 = vld [vmem:[%s3191_s2 + $0x140] sm:$0xff] }
 0x27c   :  { %1427 = vmatpush3.msra.mxu1 %v2585_v6  ;;  %3339 = vst [vmem:[#allocation57_spill] sm:$0xff] %v2606_v12  ;;  %v2810_v6 = vld [vmem:[%s3191_s2 + $0x360] sm:$0xff] }
 0x27d   :  { %1428 = vmatprep.subr.mxu1 %v2022_v14  ;;  %v2613_v14 = vld [vmem:[%s3191_s2 + $0x138] sm:$0xff]  ;;  %3354 = vst [vmem:[#allocation68_spill] sm:$0xff] %v2810_v6 }
 0x27e   :  { %1429 = vmatpush3.msra.mxu1 %v2592_v8  ;;  %3340 = vst [vmem:[#allocation58_spill] sm:$0xff] %v2613_v14  ;;  %v2803_v8 = vld [vmem:[%s3191_s2 + $0x368] sm:$0xff] }
 0x27f   :  { %1430 = vmatprep.subr.mxu1 %v2036_v16  ;;  %v2620_v16 = vld [vmem:[%s3191_s2 + $0x130] sm:$0xff]  ;;  %3352 = vst [vmem:[#allocation67_spill] sm:$0xff] %v2803_v8 }
 0x280   :  { %1431 = vmatpush3.msra.mxu1 %v2599_v10  ;;  %3341 = vst [vmem:[#allocation59_spill] sm:$0xff] %v2620_v16  ;;  %v3351_v10 = vld [vmem:[#allocation28_spill] sm:$0xff] }
 0x281   :  { %1432 = vmatprep.subr.mxu1 %v2050_v18  ;;  %v2627_v18 = vld [vmem:[%s3191_s2 + $0x128] sm:$0xff] }
 0x282   :  { %1433 = vmatpush3.msra.mxu1 %v2606_v12  ;;  %3342 = vst [vmem:[#allocation60_spill] sm:$0xff] %v2627_v18  ;;  %v2796_v12 = vld [vmem:[%s3191_s2 + $0x370] sm:$0xff] }
 0x283   :  { %1434 = vmatprep.subr.mxu1 %v2064_v20  ;;  %v2634_v20 = vld [vmem:[%s3191_s2 + $0x120] sm:$0xff]  ;;  %3350 = vst [vmem:[#allocation66_spill] sm:$0xff] %v2796_v12 }
 0x284   :  { %1435 = vmatpush3.msra.mxu1 %v2613_v14  ;;  %3343 = vst [vmem:[#allocation61_spill] sm:$0xff] %v2634_v20  ;;  %v2791_v14 = vld [vmem:[%s3191_s2 + $0x378] sm:$0xff] }
 0x285   :  { %1436 = vmatprep.subr.mxu1 %v2078_v22  ;;  %v3348_v22 = vld [vmem:[#allocation5_spill] sm:$0xff] }
 0x286   :  { %1437 = vmatpush3.msra.mxu1 %v2620_v16  ;;  %v2782_v16 = vld [vmem:[%s3191_s2 + $0x200] sm:$0xff]  ;;  %3349 = vst [vmem:[#allocation5_spill] sm:$0xff] %v2791_v14 }
 0x287   :  { %1438 = vmatprep.subr.mxu1 %v2092_v24  ;;  %v2775_v24 = vld [vmem:[%s3191_s2 + $0x208] sm:$0xff] }
 0x288   :  { %1439 = vmatpush3.msra.mxu1 %v2627_v18 }
 0x289   :  { %1440 = vmatprep.subr.mxu1 %v2106_v26 }
 0x28a   :  { %1441 = vmatpush3.msra.mxu1 %v2634_v20 }
 0x28b   :  { %1442 = vmatprep.subr.mxu1 %v2120_v28  ;;  %v2662_v28 = vld [vmem:[%s3191_s2 + $0x100] sm:$0xff] }
 0x28c   :  { %1443 = vmatpush3.msra.mxu1 %v2641_v25  ;;  %3347 = vst [vmem:[#allocation65_spill] sm:$0xff] %v2662_v28 }
 0x28d   :  { %v1415_v60 = vpop.f32.mrf.mxu0  ;;  %1444 = vmatprep.subr.mxu1 %v2148_v31 }
 0x28e   :  { %1445 = vmatpush3.msra.mxu1 %v2648_v27 }
 0x28f   :  { %v1416_v20 = vpop.f32.mrf.mxu0  ;;  %1446 = vmatprep.subr.mxu1 %v2155_v32 }
 0x290   :  { %v1417_v26 = vadd.f32 %v1416_v20, %v1415_v60  ;;  %1447 = vmatpush3.msra.mxu1 %v2655_v5  ;;  %v2679_v20 = vld [vmem:[%s3191_s2 + $0x278] sm:$0xff]  ;;  %v2684_v60 = vld [vmem:[%s3191_s2 + $0x270] sm:$0xff]  ;;  %v2756_v5 = vld [vmem:[%s3191_s2 + $0x220] sm:$0xff] }
 0x291   :  { %1448 = vmatprep.subr.mxu1 %v2160_v33  ;;  %1454 = vmatpush3.msra.mxu0 %v2679_v20  ;;  %v2747_v33 = vld [vmem:[%s3191_s2 + $0x228] sm:$0xff] }
 0x292   :  { %1449 = vmatpush3.msra.mxu1 %v2662_v28  ;;  %vm516_vm7 = vcmp.gt.f32.partialorder %v1417_v26, %v2263_v52  ;;  %v517_v31 = vsub.f32 %v1417_v26, %v2263_v52  ;;  %vm519_vm8 = vcmp.lt.f32.partialorder %v1417_v26, %v2266_v53  ;;  %v520_v32 = vadd.f32 %v1417_v26, %v2263_v52  ;;  %v2691_v26 = vld [vmem:[%s3191_s2 + $0x268] sm:$0xff]  ;;  %v2740_v28 = vld [vmem:[%s3191_s2 + $0x230] sm:$0xff]  ;;  %v2763_v53 = vld [vmem:[%s3191_s2 + $0x218] sm:$0xff] }
 0x293   :  { %1488 = vmatprep.subr.mxu1 %v2301_v47  ;;  %1455 = vmatprep.subr.mxu0 %v2173_v35  ;;  %v2733_v47 = vld [vmem:[%s3191_s2 + $0x238] sm:$0xff]  ;;  %v2769_v52 = vld [vmem:[%s3191_s2 + $0x210] sm:$0xff] }
 0x294   :  { %v518_v27 = vsel %vm516_vm7, %v517_v31, 0.0  ;;  %v521_v25 = vsel %vm519_vm8, %v520_v32, 0.0  ;;  %1456 = vmatpush3.msra.mxu0 %v2684_v60  ;;  %v2705_v31 = vld [vmem:[%s3191_s2 + $0x258] sm:$0xff]  ;;  %v2712_v32 = vld [vmem:[%s3191_s2 + $0x250] sm:$0xff] }
 0x295   :  { %v2672_v18 = vadd.f32 %v521_v25, %v518_v27  ;;  %1457 = vmatprep.subr.mxu0 %v2181_v36  ;;  %v2719_v25 = vld [vmem:[%s3191_s2 + $0x248] sm:$0xff]  ;;  %v2726_v27 = vld [vmem:[%s3191_s2 + $0x240] sm:$0xff] }
 0x296   :  { %1458 = vmatpush3.msra.mxu0 %v2691_v26 }
 0x297   :  { %603 = vmatprep.mubr.f32.mxu1 %v2672_v18  ;;  %1459 = vmatprep.subr.mxu0 %v2188_v37 }
 0x298   :  { %604 = vmatmul.mubr.f32.vlgmr.msra.gmra.mxu1 %v2402_v0  ;;  %v2698_v0 = vld [vmem:[%s3191_s2 + $0x260] sm:$0xff] }
 0x299   :  { %1460 = vmatpush3.msra.mxu0 %v2698_v0  ;;  %1489 = vmatpush3.msra.mxu1 %v2791_v14  ;;  %v3357_v14 = vld [vmem:[#allocation31_spill] sm:$0xff] }
 0x29a   :  { %1461 = vmatprep.subr.mxu0 %v2195_v38  ;;  %1490 = vmatprep.subr.mxu1 %v3351_v10  ;;  %v2817_v10 = vld [vmem:[%s3191_s2 + $0x358] sm:$0xff] }
 0x29b   :  { %1462 = vmatpush3.msra.mxu0 %v2705_v31  ;;  %1491 = vmatpush3.msra.mxu1 %v2796_v12  ;;  %3356 = vst [vmem:[#allocation69_spill] sm:$0xff] %v2817_v10  ;;  %v3359_v12 = vld [vmem:[#allocation32_spill] sm:$0xff] }
 0x29c   :  { %1463 = vmatprep.subr.mxu0 %v2202_v39 }
 0x29d   :  { %1464 = vmatpush3.msra.mxu0 %v2712_v32 }
 0x29e   :  { %1465 = vmatprep.subr.mxu0 %v2209_v40 }
 0x29f   :  { %1466 = vmatpush3.msra.mxu0 %v2719_v25 }
 0x2a0   :  { %1467 = vmatprep.subr.mxu0 %v2216_v41 }
 0x2a1   :  { %1468 = vmatpush3.msra.mxu0 %v2726_v27 }
 0x2a2   :  { %1469 = vmatprep.subr.mxu0 %v2223_v42 }
 0x2a3   :  { %1470 = vmatpush3.msra.mxu0 %v2733_v47 }
 0x2a4   :  { %1471 = vmatprep.subr.mxu0 %v2230_v43 }
 0x2a5   :  { %1472 = vmatpush3.msra.mxu0 %v2740_v28 }
 0x2a6   :  { %1473 = vmatprep.subr.mxu0 %v2237_v44 }
 0x2a7   :  { %1474 = vmatpush3.msra.mxu0 %v2747_v33 }
 0x2a8   :  { %1475 = vmatprep.subr.mxu0 %v2244_v45 }
 0x2a9   :  { %1476 = vmatpush3.msra.mxu0 %v2756_v5 }
 0x2aa   :  { %1477 = vmatprep.subr.mxu0 %v2251_v46 }
 0x2ab   :  { %1478 = vmatpush3.msra.mxu0 %v2763_v53 }
 0x2ac   :  { %1479 = vmatprep.subr.mxu0 %v2280_v61 }
 0x2ad   :  { %1480 = vmatpush3.msra.mxu0 %v2769_v52 }
 0x2ae   :  { %1481 = vmatprep.subr.mxu0 %v2287_v62 }
 0x2af   :  { %1482 = vmatpush3.msra.mxu0 %v2775_v24 }
 0x2b0   :  { %1483 = vmatprep.subr.mxu0 %v2294_v63 }
 0x2b1   :  { %1484 = vmatpush3.msra.mxu0 %v2782_v16 }
 0x2b2   :  { %1523 = vmatprep.subr.mxu0 %v3348_v22  ;;  %v3353_v22 = vld [vmem:[#allocation29_spill] sm:$0xff] }
 0x2b3   :  { %1492 = vmatprep.subr.mxu1 %v3353_v22  ;;  %v2824_v22 = vld [vmem:[%s3191_s2 + $0x350] sm:$0xff] }
 0x2b4   :  { %1493 = vmatpush3.msra.mxu1 %v2803_v8  ;;  %3358 = vst [vmem:[#allocation70_spill] sm:$0xff] %v2824_v22  ;;  %v3361_v8 = vld [vmem:[#allocation33_spill] sm:$0xff] }
 0x2b5   :  { %1494 = vmatprep.subr.mxu1 %v3355_v21  ;;  %v2831_v21 = vld [vmem:[%s3191_s2 + $0x348] sm:$0xff] }
 0x2b6   :  { %1495 = vmatpush3.msra.mxu1 %v2810_v6  ;;  %3360 = vst [vmem:[#allocation71_spill] sm:$0xff] %v2831_v21  ;;  %v3363_v6 = vld [vmem:[#allocation34_spill] sm:$0xff] }
 0x2b7   :  { %1496 = vmatprep.subr.mxu1 %v3357_v14  ;;  %v2838_v14 = vld [vmem:[%s3191_s2 + $0x340] sm:$0xff] }
 0x2b8   :  { %1497 = vmatpush3.msra.mxu1 %v2817_v10  ;;  %3362 = vst [vmem:[#allocation72_spill] sm:$0xff] %v2838_v14  ;;  %v3365_v10 = vld [vmem:[#allocation35_spill] sm:$0xff] }
 0x2b9   :  { %1498 = vmatprep.subr.mxu1 %v3359_v12  ;;  %v2845_v12 = vld [vmem:[%s3191_s2 + $0x338] sm:$0xff] }
 0x2ba   :  { %1499 = vmatpush3.msra.mxu1 %v2824_v22  ;;  %3364 = vst [vmem:[#allocation73_spill] sm:$0xff] %v2845_v12  ;;  %v3367_v22 = vld [vmem:[#allocation36_spill] sm:$0xff] }
 0x2bb   :  { %1500 = vmatprep.subr.mxu1 %v3361_v8  ;;  %v2852_v8 = vld [vmem:[%s3191_s2 + $0x330] sm:$0xff] }
 0x2bc   :  { %1501 = vmatpush3.msra.mxu1 %v2831_v21  ;;  %3366 = vst [vmem:[#allocation74_spill] sm:$0xff] %v2852_v8  ;;  %v3368_v21 = vld [vmem:[#allocation37_spill] sm:$0xff] }
 0x2bd   :  { %1502 = vmatprep.subr.mxu1 %v3363_v6  ;;  %v2859_v6 = vld [vmem:[%s3191_s2 + $0x328] sm:$0xff] }
 0x2be   :  { %1503 = vmatpush3.msra.mxu1 %v2838_v14 }
 0x2bf   :  { %1504 = vmatprep.subr.mxu1 %v3365_v10  ;;  %v3369_v10 = vld [vmem:[#allocation38_spill] sm:$0xff] }
 0x2c0   :  { %1505 = vmatpush3.msra.mxu1 %v2845_v12 }
 0x2c1   :  { %1506 = vmatprep.subr.mxu1 %v3367_v22 }
 0x2c2   :  { %1507 = vmatpush3.msra.mxu1 %v2852_v8 }
 0x2c3   :  { %1508 = vmatprep.subr.mxu1 %v3368_v21 }
 0x2c4   :  { %1509 = vmatpush3.msra.mxu1 %v2859_v6 }
 0x2c5   :  { %1510 = vmatprep.subr.mxu1 %v3369_v10 }
 0x333   :  { %v2865_v14 = vpop.f32.mrf.mxu1 }
 0x335   :  { %v1821_v17 = vpop.f32.mrf.mxu1 }
 0x358   :  { %v1450_v34 = vpop.f32.mrf.mxu1 }
 0x35a   :  { %v1451_v12 = vpop.f32.mrf.mxu1 }
 0x35b   :  { %v1452_v19 = vadd.f32 %v1451_v12, %v1450_v34 }
 0x35d   :  { %vm609_vm9 = vcmp.gt.f32.partialorder %v1452_v19, %v2393_v55  ;;  %v610_v22 = vsub.f32 %v1452_v19, %v2393_v55  ;;  %vm612_vm10 = vcmp.lt.f32.partialorder %v1452_v19, %v2396_v54  ;;  %v613_v8 = vadd.f32 %v1452_v19, %v2393_v55 }
 0x35f   :  { %v611_v29 = vsel %vm609_vm9, %v610_v22, 0.0  ;;  %v614_v21 = vsel %vm612_vm10, %v613_v8, 0.0  ;;  %v1874_v22 = vld [vmem:[%s3191_s2 + $0x1c8] sm:$0xff]  ;;  %vm1219_vm9 = vcmask 64512   ;;  %vm1211_vm10 = vcmask 58368  }
 0x360   :  { %v2871_v23 = vadd.f32 %v614_v21, %v611_v29  ;;  %v3371_v29 = vld [vmem:[#allocation7_spill] sm:$0xff] }
 0x362   :  { %696 = vmatprep.mubr.f32.mxu0 %v2871_v23 }
 0x363   :  { %697 = vmatmul.mubr.f32.vlgmr.msra.gmra.mxu0 %v2553_v15  ;;  %v3370_v15 = vld [vmem:[#allocation6_spill] sm:$0xff] }
 0x364   :  { %1524 = vmatpush3.msra.mxu0 %v2407_v59  ;;  %866 = vmatprep.mubr.f32.mxu0 %v2135_v30  ;;  %v3376_v30 = vld [vmem:[#allocation12_spill] sm:$0xff] }
 0x365   :  { %1525 = vmatprep.subr.mxu0 %v1937_v2  ;;  %v3372_v2 = vld [vmem:[#allocation8_spill] sm:$0xff] }
 0x366   :  { %1526 = vmatpush3.msra.mxu0 %v2413_v56  ;;  %v3377_v59 = vld [vmem:[#allocation40_spill] sm:$0xff]  ;;  %v3378_v56 = vld [vmem:[#allocation14_spill] sm:$0xff] }
 0x367   :  { %1527 = vmatprep.subr.mxu0 %v1947_v3  ;;  %v3373_v3 = vld [vmem:[#allocation9_spill] sm:$0xff] }
 0x368   :  { %1528 = vmatpush3.msra.mxu0 %v2421_v1  ;;  %v3379_v1 = vld [vmem:[#allocation41_spill] sm:$0xff] }
 0x369   :  { %1529 = vmatprep.subr.mxu0 %v1956_v4  ;;  %v3374_v4 = vld [vmem:[#allocation10_spill] sm:$0xff] }
 0x36a   :  { %1530 = vmatpush3.msra.mxu0 %v2428_v48  ;;  %v3380_v48 = vld [vmem:[#allocation16_spill] sm:$0xff] }
 0x36b   :  { %1531 = vmatprep.subr.mxu0 %v1974_v7  ;;  %v3375_v7 = vld [vmem:[#allocation11_spill] sm:$0xff] }
 0x36c   :  { %1532 = vmatpush3.msra.mxu0 %v2435_v49  ;;  %v3381_v49 = vld [vmem:[#allocation42_spill] sm:$0xff] }
 0x36d   :  { %1533 = vmatprep.subr.mxu0 %v3370_v15  ;;  %v3400_v15 = vld [vmem:[#allocation56_spill] sm:$0xff] }
 0x36e   :  { %1534 = vmatpush3.msra.mxu0 %v2442_v51  ;;  %v3383_v51 = vld [vmem:[#allocation43_spill] sm:$0xff] }
 0x36f   :  { %1535 = vmatprep.subr.mxu0 %v3371_v29  ;;  %v1875_v29 = vld [vmem:[%s3191_s2 + $0x1c0] sm:$0xff] }
 0x370   :  { %1536 = vmatpush3.msra.mxu0 %v2449_v57  ;;  %v3385_v57 = vld [vmem:[#allocation44_spill] sm:$0xff] }
 0x371   :  { %1537 = vmatprep.subr.mxu0 %v3372_v2  ;;  %v3401_v2 = vld [vmem:[#allocation57_spill] sm:$0xff] }
 0x372   :  { %1538 = vmatpush3.msra.mxu0 %v2456_v58  ;;  %v3393_v58 = vld [vmem:[#allocation49_spill] sm:$0xff] }
 0x373   :  { %1539 = vmatprep.subr.mxu0 %v3373_v3  ;;  %v1876_v3 = vld [vmem:[%s3191_s2 + $0x1b8] sm:$0xff] }
 0x374   :  { %1540 = vmatpush3.msra.mxu0 %v2463_v9  ;;  %v3382_v9 = vld [vmem:[#allocation18_spill] sm:$0xff] }
 0x375   :  { %1541 = vmatprep.subr.mxu0 %v3374_v4  ;;  %v3402_v4 = vld [vmem:[#allocation58_spill] sm:$0xff] }
 0x376   :  { %1542 = vmatpush3.msra.mxu0 %v2470_v11  ;;  %v3384_v11 = vld [vmem:[#allocation20_spill] sm:$0xff] }
 0x377   :  { %1543 = vmatprep.subr.mxu0 %v3375_v7  ;;  %v3403_v7 = vld [vmem:[#allocation13_spill] sm:$0xff] }
 0x378   :  { %1544 = vmatpush3.msra.mxu0 %v2477_v13  ;;  %v3386_v13 = vld [vmem:[#allocation24_spill] sm:$0xff] }
 0x379   :  { %1545 = vmatprep.subr.mxu0 %v3376_v30  ;;  %v3404_v30 = vld [vmem:[#allocation59_spill] sm:$0xff] }
 0x37a   :  { %1546 = vmatpush3.msra.mxu0 %v3377_v59  ;;  %v3405_v59 = vld [vmem:[#allocation15_spill] sm:$0xff] }
 0x37b   :  { %1547 = vmatprep.subr.mxu0 %v3378_v56 }
 0x37c   :  { %1548 = vmatpush3.msra.mxu0 %v3379_v1  ;;  %v3406_v1 = vld [vmem:[#allocation60_spill] sm:$0xff] }
 0x37d   :  { %1549 = vmatprep.subr.mxu0 %v3380_v48  ;;  %v3407_v48 = vld [vmem:[#allocation17_spill] sm:$0xff] }
 0x37e   :  { %1550 = vmatpush3.msra.mxu0 %v3381_v49 }
 0x37f   :  { %1551 = vmatprep.subr.mxu0 %v3382_v9  ;;  %v3408_v9 = vld [vmem:[#allocation61_spill] sm:$0xff] }
 0x380   :  { %1552 = vmatpush3.msra.mxu0 %v3383_v51 }
 0x381   :  { %1553 = vmatprep.subr.mxu0 %v3384_v11  ;;  %v3409_v11 = vld [vmem:[#allocation19_spill] sm:$0xff] }
 0x382   :  { %1554 = vmatpush3.msra.mxu0 %v3385_v57  ;;  %v3410_v57 = vld [vmem:[#allocation62_spill] sm:$0xff] }
 0x383   :  { %867 = vmatmul.mubr.f32.vlgmr.msra.gmra.mxu0 %v2672_v18  ;;  %1593 = vmatprep.subr.mxu0 %v3386_v13  ;;  %v1869_v18 = vld [vmem:[%s3191_s2 + $0x1f0] sm:$0xff]  ;;  %v3411_v13 = vld [vmem:[#allocation21_spill] sm:$0xff] }
 0x384   :  { %1594 = vmatpush3.msra.mxu0 %v2679_v20  ;;  %v1870_v20 = vld [vmem:[%s3191_s2 + $0x1e8] sm:$0xff] }
 0x385   :  { %1595 = vmatprep.subr.mxu0 %v2173_v35  ;;  %v3388_v35 = vld [vmem:[#allocation39_spill] sm:$0xff] }
 0x386   :  { %1596 = vmatpush3.msra.mxu0 %v2684_v60  ;;  %v3396_v60 = vld [vmem:[#allocation52_spill] sm:$0xff] }
 0x387   :  { %1597 = vmatprep.subr.mxu0 %v2181_v36  ;;  %v2951_v36 = vld [vmem:[%s3191_s2 + $0x318] sm:$0xff] }
 0x388   :  { %1598 = vmatpush3.msra.mxu0 %v2691_v26  ;;  %v1871_v26 = vld [vmem:[%s3191_s2 + $0x1e0] sm:$0xff] }
 0x389   :  { %1599 = vmatprep.subr.mxu0 %v2188_v37  ;;  %v3389_v37 = vld [vmem:[#allocation45_spill] sm:$0xff] }
 0x38a   :  { %1600 = vmatpush3.msra.mxu0 %v2698_v0  ;;  %v3397_v0 = vld [vmem:[#allocation53_spill] sm:$0xff] }
 0x38b   :  { %1601 = vmatprep.subr.mxu0 %v2195_v38  ;;  %v2963_v38 = vld [vmem:[%s3191_s2 + $0x308] sm:$0xff] }
 0x38c   :  { %1602 = vmatpush3.msra.mxu0 %v2705_v31  ;;  %v1872_v31 = vld [vmem:[%s3191_s2 + $0x1d8] sm:$0xff] }
 0x38d   :  { %1603 = vmatprep.subr.mxu0 %v2202_v39  ;;  %v3390_v39 = vld [vmem:[#allocation46_spill] sm:$0xff] }
 0x38e   :  { %1604 = vmatpush3.msra.mxu0 %v2712_v32  ;;  %v3398_v32 = vld [vmem:[#allocation54_spill] sm:$0xff] }
 0x38f   :  { %1605 = vmatprep.subr.mxu0 %v2209_v40  ;;  %v2970_v40 = vld [vmem:[%s3191_s2 + $0x300] sm:$0xff] }
 0x390   :  { %1606 = vmatpush3.msra.mxu0 %v2719_v25  ;;  %v1873_v25 = vld [vmem:[%s3191_s2 + $0x1d0] sm:$0xff] }
 0x391   :  { %1607 = vmatprep.subr.mxu0 %v2216_v41  ;;  %v3391_v41 = vld [vmem:[#allocation47_spill] sm:$0xff] }
 0x392   :  { %1608 = vmatpush3.msra.mxu0 %v2726_v27  ;;  %v3399_v27 = vld [vmem:[#allocation55_spill] sm:$0xff] }
 0x393   :  { %1609 = vmatprep.subr.mxu0 %v2223_v42  ;;  %v1868_v42 = vld [vmem:[%s3191_s2 + $0x1f8] sm:$0xff] }
 0x394   :  { %1610 = vmatpush3.msra.mxu0 %v2733_v47  ;;  %v3392_v47 = vld [vmem:[#allocation48_spill] sm:$0xff] }
 0x395   :  { %1611 = vmatprep.subr.mxu0 %v2230_v43  ;;  %v21_v43 = vld [vmem:[%s3191_s2 + $0x48b] sm:$0x1] }
 0x396   :  { %1612 = vmatpush3.msra.mxu0 %v2740_v28  ;;  %v2943_v28 = vld [vmem:[%s3191_s2 + $0x320] sm:$0xff] }
 0x397   :  { %1613 = vmatprep.subr.mxu0 %v2237_v44  ;;  %1511 = vmatpush3.msra.mxu1 %v2943_v28  ;;  %v421_v44 = vsub.f32 0.0, %v21_v43 }
 0x398   :  { %1614 = vmatpush3.msra.mxu0 %v2747_v33  ;;  %v3387_v33 = vmov 0.0   ;;  %1512 = vmatprep.subr.mxu1 %v3388_v35 }
 0x399   :  { %1615 = vmatprep.subr.mxu0 %v2244_v45  ;;  %1513 = vmatpush3.msra.mxu1 %v2951_v36  ;;  %v2982_v45 = vrot.slane %v21_v43, %v2260_v50 }
 0x39a   :  { %1616 = vmatpush3.msra.mxu0 %v2756_v5  ;;  %1514 = vmatprep.subr.mxu1 %v3389_v37  ;;  %v3395_v5 = vld [vmem:[#allocation51_spill] sm:$0xff] }
 0x39b   :  { %1617 = vmatprep.subr.mxu0 %v2251_v46  ;;  %v2985_v46 = vrot.slane %v421_v44, %v2260_v50  ;;  %vm418_vm11 = vcmp.gt.f32.partialorder %v2865_v14, %v2982_v45  ;;  %v3413_v44 = vld [vmem:[#allocation26_spill] sm:$0xff] }
 0x39c   :  { %1618 = vmatpush3.msra.mxu0 %v2763_v53  ;;  %v419_v53 = vsub.f32 %v2865_v14, %v2982_v45 }
 0x39d   :  { %1619 = vmatprep.subr.mxu0 %v2280_v61  ;;  %v427_v61 = vadd.f32 %v2982_v45, %v2865_v14  ;;  %vm426_vm12 = vcmp.lt.f32.partialorder %v2865_v14, %v2985_v46  ;;  %v3394_v14 = vld [vmem:[#allocation50_spill] sm:$0xff] }
 0x39e   :  { %1620 = vmatpush3.msra.mxu0 %v2769_v52  ;;  %v420_v34 = vsel %vm418_vm11, %v419_v53, 0.0  ;;  %v3414_v53 = vld [vmem:[#allocation63_spill] sm:$0xff] }
 0x39f   :  { %1621 = vmatprep.subr.mxu0 %v2287_v62  ;;  %v428_v17 = vsel %vm426_vm12, %v427_v61, 0.0  ;;  %v3415_v61 = vld [vmem:[#allocation22_spill] sm:$0xff] }
 0x3a0   :  { %1622 = vmatpush3.msra.mxu0 %v2775_v24  ;;  %v2956_v24 = vld [vmem:[%s3191_s2 + $0x310] sm:$0xff] }
 0x3a1   :  { %1623 = vmatprep.subr.mxu0 %v2294_v63  ;;  %1515 = vmatpush3.msra.mxu1 %v2956_v24 }
 0x3a2   :  { %1624 = vmatpush3.msra.mxu0 %v2782_v16  ;;  %1516 = vmatprep.subr.mxu1 %v3390_v39  ;;  %v429_v16 = vadd.f32 %v428_v17, %v420_v34  ;;  %v3417_v34 = vld [vmem:[#allocation23_spill] sm:$0xff]  ;;  %v3418_v17 = vld [vmem:[#allocation65_spill] sm:$0xff] }
 0x3a3   :  { %1822 = vmatprep.subr.mxu0 %v3387_v33  ;;  %1517 = vmatpush3.msra.mxu1 %v2963_v38 }
 0x3a4   :  { %1518 = vmatprep.subr.mxu1 %v3391_v41 }
 0x3a5   :  { %1519 = vmatpush3.msra.mxu1 %v2970_v40 }
 0x3a6   :  { %1558 = vmatprep.subr.mxu1 %v1868_v42  ;;  %v3412_v42 = vld [vmem:[#allocation25_spill] sm:$0xff] }
 0x423   :  { %v1485_v52 = vpop.f32.mrf.mxu0 }
 0x425   :  { %v1486_v62 = vpop.f32.mrf.mxu0 }
 0x426   :  { %v1487_v63 = vadd.f32 %v1486_v62, %v1485_v52 }
 0x428   :  { %vm702_vm13 = vcmp.gt.f32.partialorder %v1487_v63, %v3392_v47  ;;  %v703_v50 = vsub.f32 %v1487_v63, %v3392_v47  ;;  %vm705_vm14 = vcmp.lt.f32.partialorder %v1487_v63, %v3393_v58  ;;  %v706_v19 = vadd.f32 %v1487_v63, %v3392_v47 }
 0x42a   :  { %v704_v21 = vsel %vm702_vm13, %v703_v50, 0.0  ;;  %v707_v8 = vsel %vm705_vm14, %v706_v19, 0.0  ;;  %v3416_v50 = vld [vmem:[#allocation64_spill] sm:$0xff] }
 0x42b   :  { %v2999_v12 = vadd.f32 %v707_v8, %v704_v21  ;;  %v3419_v21 = vld [vmem:[#allocation27_spill] sm:$0xff]  ;;  %v3420_v8 = vld [vmem:[#allocation5_spill] sm:$0xff] }
 0x42d   :  { %789 = vmatprep.mubr.f32.mxu1 %v2999_v12 }
 0x42e   :  { %790 = vmatmul.mubr.f32.vlgmr.msra.gmra.mxu1 %v429_v16  ;;  %v3421_v16 = vld [vmem:[#allocation28_spill] sm:$0xff] }
 0x42f   :  { %1559 = vmatpush3.msra.mxu1 %v3394_v14  ;;  %v3422_v14 = vld [vmem:[#allocation66_spill] sm:$0xff] }
 0x430   :  { %1560 = vmatprep.subr.mxu1 %v1869_v18  ;;  %v3423_v18 = vld [vmem:[#allocation29_spill] sm:$0xff] }
 0x431   :  { %1561 = vmatpush3.msra.mxu1 %v3395_v5  ;;  %v3424_v5 = vld [vmem:[#allocation67_spill] sm:$0xff] }
 0x432   :  { %1562 = vmatprep.subr.mxu1 %v1870_v20  ;;  %v3425_v20 = vld [vmem:[#allocation30_spill] sm:$0xff] }
 0x433   :  { %1563 = vmatpush3.msra.mxu1 %v3396_v60  ;;  %v3426_v60 = vld [vmem:[#allocation68_spill] sm:$0xff] }
 0x434   :  { %1564 = vmatprep.subr.mxu1 %v1871_v26  ;;  %v3427_v26 = vld [vmem:[#allocation31_spill] sm:$0xff] }
 0x435   :  { %1565 = vmatpush3.msra.mxu1 %v3397_v0  ;;  %v3428_v0 = vld [vmem:[#allocation69_spill] sm:$0xff] }
 0x436   :  { %1566 = vmatprep.subr.mxu1 %v1872_v31  ;;  %v3430_v31 = vld [vmem:[#allocation70_spill] sm:$0xff] }
 0x437   :  { %1567 = vmatpush3.msra.mxu1 %v3398_v32  ;;  %v3431_v32 = vld [vmem:[#allocation33_spill] sm:$0xff] }
 0x438   :  { %1568 = vmatprep.subr.mxu1 %v1873_v25  ;;  %v3432_v25 = vld [vmem:[#allocation71_spill] sm:$0xff] }
 0x439   :  { %1569 = vmatpush3.msra.mxu1 %v3399_v27  ;;  %v3433_v27 = vld [vmem:[#allocation34_spill] sm:$0xff] }
 0x43a   :  { %1570 = vmatprep.subr.mxu1 %v1874_v22  ;;  %v3434_v22 = vld [vmem:[#allocation72_spill] sm:$0xff] }
 0x43b   :  { %1571 = vmatpush3.msra.mxu1 %v3400_v15  ;;  %v3435_v15 = vld [vmem:[#allocation35_spill] sm:$0xff] }
 0x43c   :  { %1572 = vmatprep.subr.mxu1 %v1875_v29  ;;  %v3436_v29 = vld [vmem:[#allocation73_spill] sm:$0xff] }
 0x43d   :  { %1573 = vmatpush3.msra.mxu1 %v3401_v2  ;;  %v3437_v2 = vld [vmem:[#allocation36_spill] sm:$0xff] }
 0x43e   :  { %1574 = vmatprep.subr.mxu1 %v1876_v3  ;;  %v3438_v3 = vld [vmem:[#allocation74_spill] sm:$0xff] }
 0x43f   :  { %1575 = vmatpush3.msra.mxu1 %v3402_v4  ;;  %v3439_v4 = vld [vmem:[#allocation37_spill] sm:$0xff] }
 0x440   :  { %1576 = vmatprep.subr.mxu1 %v3403_v7 }
 0x441   :  { %1577 = vmatpush3.msra.mxu1 %v3404_v30  ;;  %v1124_v30 = vld [vmem:[%s3191_s2 + $0x470] sm:$0xff] }
 0x442   :  { %1578 = vmatprep.subr.mxu1 %v3405_v59  ;;  %v1120_v59 = vld [vmem:[%s3191_s2 + $0x450] sm:$0xff] }
 0x443   :  { %v1555_v56 = vpop.f32.mrf.mxu0  ;;  %1579 = vmatpush3.msra.mxu1 %v3406_v1  ;;  %v1118_v1 = vld [vmem:[%s3191_s2 + $0x440] sm:$0xff] }
 0x444   :  { %1580 = vmatprep.subr.mxu1 %v3407_v48  ;;  %v1117_v48 = vld [vmem:[%s3191_s2 + $0x438] sm:$0xff] }
 0x445   :  { %v1556_v49 = vpop.f32.mrf.mxu0  ;;  %1581 = vmatpush3.msra.mxu1 %v3408_v9  ;;  %v1115_v9 = vld [vmem:[%s3191_s2 + $0x428] sm:$0xff] }
 0x446   :  { %v1557_v51 = vadd.f32 %v1556_v49, %v1555_v56  ;;  %1582 = vmatprep.subr.mxu1 %v3409_v11  ;;  %v1119_v56 = vld [vmem:[%s3191_s2 + $0x448] sm:$0xff]  ;;  %v1116_v49 = vld [vmem:[%s3191_s2 + $0x430] sm:$0xff] }
 0x447   :  { %1583 = vmatpush3.msra.mxu1 %v3410_v57 }
 0x448   :  { %1584 = vmatprep.subr.mxu1 %v3411_v13  ;;  %vm872_vm15 = vcmp.gt.f32.partialorder %v1557_v51, %v3412_v42  ;;  %v873_v43 = vsub.f32 %v1557_v51, %v3412_v42  ;;  %vm875_vm1 = vcmp.lt.f32.partialorder %v1557_v51, %v3413_v44  ;;  %v876_v52 = vadd.f32 %v1557_v51, %v3412_v42 }
 0x449   :  { %1585 = vmatpush3.msra.mxu1 %v3414_v53 }
 0x44a   :  { %1586 = vmatprep.subr.mxu1 %v3415_v61  ;;  %v874_v62 = vsel %vm872_vm15, %v873_v43, 0.0  ;;  %v877_v63 = vsel %vm875_vm1, %v876_v52, 0.0 }
 0x44b   :  { %1587 = vmatpush3.msra.mxu1 %v3416_v50  ;;  %v878_v19 = vadd.f32 %v877_v63, %v874_v62 }
 0x44c   :  { %1588 = vmatprep.subr.mxu1 %v3417_v34  ;;  %v1111_v34 = vld [vmem:[%s3191_s2 + $0x408] sm:$0xff] }
 0x44d   :  { %1589 = vmatpush3.msra.mxu1 %v3418_v17  ;;  %943 = vmatprep.mubr.f32.mxu1 %v878_v19  ;;  %v1114_v19 = vld [vmem:[%s3191_s2 + $0x420] sm:$0xff] }
 0x44e   :  { %944 = vmatmul.mubr.f32.vlgmr.msra.gmra.mxu1 %v2871_v23  ;;  %1628 = vmatprep.subr.mxu1 %v3419_v21  ;;  %v3429_v23 = vld [vmem:[#allocation32_spill] sm:$0xff] }
 0x44f   :  { %1629 = vmatpush3.msra.mxu1 %v3420_v8  ;;  %v1110_v17 = vld [vmem:[%s3191_s2 + $0x400] sm:$0xff] }
 0x450   :  { %1630 = vmatprep.subr.mxu1 %v3421_v16 }
 0x451   :  { %1631 = vmatpush3.msra.mxu1 %v3422_v14 }
 0x452   :  { %1632 = vmatprep.subr.mxu1 %v3423_v18 }
 0x453   :  { %1633 = vmatpush3.msra.mxu1 %v3424_v5 }
 0x454   :  { %1634 = vmatprep.subr.mxu1 %v3425_v20 }
 0x455   :  { %1635 = vmatpush3.msra.mxu1 %v3426_v60 }
 0x456   :  { %1636 = vmatprep.subr.mxu1 %v3427_v26 }
 0x457   :  { %1637 = vmatpush3.msra.mxu1 %v3428_v0 }
 0x458   :  { %1638 = vmatprep.subr.mxu1 %v3429_v23 }
 0x459   :  { %1639 = vmatpush3.msra.mxu1 %v3430_v31 }
 0x45a   :  { %1640 = vmatprep.subr.mxu1 %v3431_v32 }
 0x45b   :  { %1641 = vmatpush3.msra.mxu1 %v3432_v25  ;;  %v1201_v25 = vld [vmem:[%s3190_s1] sm:$0x3] }
 0x45c   :  { %1642 = vmatprep.subr.mxu1 %v3433_v27 }
 0x45d   :  { %1643 = vmatpush3.msra.mxu1 %v3434_v22 }
 0x45e   :  { %1644 = vmatprep.subr.mxu1 %v3435_v15 }
 0x45f   :  { %1645 = vmatpush3.msra.mxu1 %v3436_v29 }
 0x460   :  { %1646 = vmatprep.subr.mxu1 %v3437_v2 }
 0x461   :  { %1647 = vmatpush3.msra.mxu1 %v3438_v3 }
 0x462   :  { %1648 = vmatprep.subr.mxu1 %v3439_v4 }
 0x463   :  { %1649 = vmatpush3.msra.mxu1 %v2859_v6 }
 0x464   :  { %1650 = vmatprep.subr.mxu1 %v3369_v10 }
 0x465   :  { %1651 = vmatpush3.msra.mxu1 %v2943_v28 }
 0x466   :  { %1652 = vmatprep.subr.mxu1 %v3388_v35 }
 0x467   :  { %1653 = vmatpush3.msra.mxu1 %v2951_v36 }
 0x468   :  { %1654 = vmatprep.subr.mxu1 %v3389_v37 }
 0x469   :  { %1655 = vmatpush3.msra.mxu1 %v2956_v24 }
 0x46a   :  { %1656 = vmatprep.subr.mxu1 %v3390_v39 }
 0x46b   :  { %1657 = vmatpush3.msra.mxu1 %v2963_v38 }
 0x46c   :  { %1658 = vmatprep.subr.mxu1 %v3391_v41 }
 0x46d   :  { %1659 = vmatpush3.msra.mxu1 %v2970_v40  ;;  %v1125_v40 = vld [vmem:[%s3191_s2 + $0x478] sm:$0xff] }
 0x46e   :  { %1857 = vmatprep.subr.mxu1 %v3387_v33 }
 0x4ee   :  { %v1520_v6 = vpop.f32.mrf.mxu1 }
 0x4f0   :  { %v1521_v10 = vpop.f32.mrf.mxu1 }
 0x4f1   :  { %v1522_v28 = vadd.f32 %v1521_v10, %v1520_v6 }
 0x4f3   :  { %v796_v11 = vsub.f32 %v1522_v28, %v2982_v45  ;;  %v799_v57 = vadd.f32 %v1522_v28, %v2982_v45  ;;  %vm795_vm4 = vcmp.gt.f32.partialorder %v1522_v28, %v2982_v45  ;;  %vm798_vm5 = vcmp.lt.f32.partialorder %v1522_v28, %v2985_v46 }
 0x4f5   :  { %v797_v52 = vsel %vm795_vm4, %v796_v11, 0.0  ;;  %v800_v53 = vsel %vm798_vm5, %v799_v57, 0.0 }
 0x4f6   :  { %v801_v50 = vadd.f32 %v800_v53, %v797_v52 }
 0x50e   :  { %v1590_v35 = vpop.f32.mrf.mxu1 }
 0x510   :  { %v1591_v7 = vpop.f32.mrf.mxu1 }
 0x511   :  { %v1592_v36 = vadd.f32 %v1591_v7, %v1590_v35 }
 0x513   :  { %vm949_vm2 = vcmp.gt.f32.partialorder %v1592_v36, %v2393_v55  ;;  %v950_v24 = vsub.f32 %v1592_v36, %v2393_v55  ;;  %vm952_vm3 = vcmp.lt.f32.partialorder %v1592_v36, %v2396_v54  ;;  %v953_v37 = vadd.f32 %v1592_v36, %v2393_v55  ;;  %v1123_v54 = vld [vmem:[%s3191_s2 + $0x468] sm:$0xff]  ;;  %v1122_v55 = vld [vmem:[%s3191_s2 + $0x460] sm:$0xff] }
 0x515   :  { %v951_v38 = vsel %vm949_vm2, %v950_v24, 0.0  ;;  %v954_v39 = vsel %vm952_vm3, %v953_v37, 0.0 }
 0x516   :  { %v955_v41 = vadd.f32 %v954_v39, %v951_v38 }
 0x518   :  { %1020 = vmatprep.mubr.f32.mxu0 %v955_v41 }
 0x519   :  { %1021 = vmatmul.mubr.f32.vlgmr.msra.gmra.mxu0 %v2999_v12  ;;  %v1121_v12 = vld [vmem:[%s3191_s2 + $0x458] sm:$0xff] }
 0x51a   :  { %1854 = vmatprep.mubr.msk.f32.mxu0 %vm1900_vm0, %v3387_v33  ;;  %1823 = vmatpush3.msra.mxu0 %v1125_v40 }
 0x51b   :  { %1824 = vmatprep.subr.mxu0 %v3387_v33 }
 0x51c   :  { %1825 = vmatpush3.msra.mxu0 %v1124_v30 }
 0x51d   :  { %1826 = vmatprep.subr.mxu0 %v3387_v33 }
 0x51e   :  { %1827 = vmatpush3.msra.mxu0 %v1123_v54 }
 0x51f   :  { %1828 = vmatprep.subr.mxu0 %v3387_v33 }
 0x520   :  { %1829 = vmatpush3.msra.mxu0 %v1122_v55 }
 0x521   :  { %1830 = vmatprep.subr.mxu0 %v3387_v33 }
 0x522   :  { %1831 = vmatpush3.msra.mxu0 %v1121_v12 }
 0x523   :  { %1832 = vmatprep.subr.mxu0 %v3387_v33 }
 0x524   :  { %1833 = vmatpush3.msra.mxu0 %v1120_v59 }
 0x525   :  { %1834 = vmatprep.subr.mxu0 %v3387_v33 }
 0x526   :  { %1835 = vmatpush3.msra.mxu0 %v1119_v56 }
 0x527   :  { %1836 = vmatprep.subr.mxu0 %v3387_v33 }
 0x528   :  { %1837 = vmatpush3.msra.mxu0 %v1118_v1 }
 0x529   :  { %1838 = vmatprep.subr.mxu0 %v3387_v33 }
 0x52a   :  { %1839 = vmatpush3.msra.mxu0 %v1117_v48 }
 0x52b   :  { %1840 = vmatprep.subr.mxu0 %v3387_v33 }
 0x52c   :  { %1841 = vmatpush3.msra.mxu0 %v1116_v49 }
 0x52d   :  { %1842 = vmatprep.subr.mxu0 %v3387_v33 }
 0x52e   :  { %1843 = vmatpush3.msra.mxu0 %v1115_v9 }
 0x52f   :  { %1844 = vmatprep.subr.mxu0 %v3387_v33 }
 0x530   :  { %1845 = vmatpush3.msra.mxu0 %v1114_v19 }
 0x531   :  { %1846 = vmatprep.subr.mxu0 %v3387_v33 }
 0x5d9   :  { %v1625_v51 = vpop.f32.mrf.mxu0 }
 0x5db   :  { %v1626_v13 = vpop.f32.mrf.mxu0 }
 0x5dc   :  { %v1627_v42 = vadd.f32 %v1626_v13, %v1625_v51 }
 0x5de   :  { %vm1026_vm6 = vcmp.gt.f32.partialorder %v1627_v42, %v3392_v47  ;;  %v1027_v43 = vsub.f32 %v1627_v42, %v3392_v47  ;;  %vm1029_vm7 = vcmp.lt.f32.partialorder %v1627_v42, %v3393_v58  ;;  %v1030_v44 = vadd.f32 %v1627_v42, %v3392_v47  ;;  %v1113_v47 = vld [vmem:[%s3191_s2 + $0x418] sm:$0xff]  ;;  %v1112_v58 = vld [vmem:[%s3191_s2 + $0x410] sm:$0xff] }
 0x5df   :  { %1847 = vmatpush3.msra.mxu0 %v1113_v47 }
 0x5e0   :  { %v1028_v61 = vsel %vm1026_vm6, %v1027_v43, 0.0  ;;  %v1031_v62 = vsel %vm1029_vm7, %v1030_v44, 0.0  ;;  %1848 = vmatprep.subr.mxu0 %v3387_v33 }
 0x5e1   :  { %v1032_v63 = vadd.f32 %v1031_v62, %v1028_v61  ;;  %1849 = vmatpush3.msra.mxu0 %v1112_v58 }
 0x5e2   :  { %1850 = vmatprep.subr.mxu0 %v3387_v33 }
 0x5e3   :  { %1097 = vmatprep.mubr.f32.mxu1 %v1032_v63  ;;  %1851 = vmatpush3.msra.mxu0 %v1111_v34 }
 0x5e4   :  { %1098 = vmatmul.mubr.f32.vlgmr.msra.gmra.mxu1 %v801_v50  ;;  %1852 = vmatprep.subr.mxu0 %v3387_v33 }
 0x5e5   :  { %1859 = vmatprep.mubr.msk.f32.mxu1 %vm1900_vm0, %v3387_v33  ;;  %1853 = vmatpush3.msra.mxu0 %v1110_v17  ;;  %v1312_v33 = vld [vmem:[%s3191_s2 + $0x48d] ss:$0 sm:$0xff] }
 0x6a4   :  { %v1660_v21 = vpop.f32.mrf.mxu1 }
 0x6a6   :  { %v1661_v8 = vpop.f32.mrf.mxu1 }
 0x6a7   :  { %v1662_v16 = vadd.f32 %v1661_v8, %v1660_v21 }
 0x6a9   :  { %vm1103_vm0 = vcmp.gt.f32.partialorder %v1662_v16, %v2982_v45  ;;  %v1104_v14 = vsub.f32 %v1662_v16, %v2982_v45  ;;  %vm1106_vm8 = vcmp.lt.f32.partialorder %v1662_v16, %v2985_v46  ;;  %v1107_v18 = vadd.f32 %v1662_v16, %v2982_v45  ;;  %v1213_v46 = vld [vmem:[%s3191_s2 + $0x480] sm:$0xff] }
 0x6aa   :  { %1858 = vmatpush3.msra.mxu1 %v1213_v46 }
 0x6ab   :  { %v1105_v5 = vsel %vm1103_vm0, %v1104_v14, 0.0  ;;  %v1108_v20 = vsel %vm1106_vm8, %v1107_v18, 0.0 }
 0x6ac   :  { %v1109_v60 = vadd.f32 %v1108_v20, %v1105_v5 }
 0x6ae   :  { %1855 = vmatmul.mubr.f32.vlgmr.msra.gmra.mxu0 %v1109_v60 }
 0x76e   :  { %v1197_v26 = vpop.f32.mrf.mxu0 }
 0x76f   :  { %v1198_v0 = vadd.f32 %v1312_v33, %v1197_v26 }
 0x770   :  { %v1856_v23 = vpop.f32.mrf.mxu0 }
 0x771   :  { %v1202_v31 = vmul.f32 0.5, %v1198_v0 }
 0x773   :  { %v1203_v32 = vmul.f32 1.442695, %v1202_v31 }
 0x775   :  { %1866 = vpow2.f32 %v1203_v32 }
 0x782   :  { %v1867_v45 = vpop.eup %1866 }
 0x783   :  { %1206 = vrot.lane.b32.xlu0 %v1867_v45, %s1901_s13 }
 0x7f5   :  { %v1207_v27 = vpop.permute.xlu0 %1206 }
 0x7f6   :  { %v1209_v22 = vmul.f32 %v1207_v27, %v1201_v25 }
 0x7f8   :  { %v1210_v15 = vadd.f32 %v1209_v22, %v1198_v0 }
 0x7fa   :  { %1860 = vmatmul.mubr.msk.f32.vlgmr.msra.gmra.mxu1 %vm1219_vm9, %v1210_v15  ;;  %1212 = vst.msk [vmem:[#allocation2] sm:$0x3] %vm1211_vm10, %v1210_v15 }
 0x7fb   :  { %1888 = shalt.err (!%p1885_p4)
}
 0x7fc   :  { %1305 = dma.vmem_to_hbm [thread:$0]  %s1303_s17, 32, %s3193_s4, [#allocation3]   ;;  %v1313_v29 = vld [vmem:[%s3191_s2 + $0x48c] ss:$0 sm:$0xff] }
 0x8ba   :  { %v1289_v2 = vpop.f32.mrf.mxu1 }
 0x8bb   :  { %v1290_v3 = vadd.f32 %v1313_v29, %v1289_v2 }
 0x8bc   :  { %v1861_v4 = vpop.f32.mrf.mxu1 }
 0x8bd   :  { %1293 = vst [vmem:[%s3192_s3] sm:$0x3] %v1290_v3 }
 0x8be   :  { %1897 = dma.done.wait [#allocation3], 32  }
 0x8bf   :  { %1898 = vsyncadd [#allocation3], 4294967264 }
 0x8c0   :  { %1311 = vsyncpa [#allocation3], 1 }

</bundles_post_ra>
